<compile_context>
chip_gen: v7x
topology: tpu7x:2x2x1
jax: 0.10.0
libtpu: 0.0.40
codegen_flags: <defaults>
</compile_context>

<pallas_src>
import functools

import jax
import jax.numpy as jnp
from jax.experimental import pallas as pl
from jax.experimental.pallas import tpu as pltpu

LANE = 128
SUBLANE = 8


def _round_up(v, m):
    return (v + m - 1) // m * m


# ----------------------------------------------------------------------------
# Pallas kernel: one grid step = B_step problems fused along the row dimension.
# ----------------------------------------------------------------------------
def pattern_encoder_kernel(
    x_ref, adj_ref, pool_ref,
    w1_ref, b1_ref,          # GCNConv  D   -> 2D
    w2_ref, b2_ref,          # GCNConv  2D  -> D
    wl1_ref, bl1_ref,        # lin1     D   -> D
    wl2_ref, bl2_ref,        # lin2     D   -> 8D
    wl22_ref, bl22_ref,      # lin22    8D  -> 8D
    wl23_ref, bl23_ref,      # lin23    8D  -> 8D
    wl3_ref, bl3_ref,        # lin3     8D  -> D
    out_ref,
):
    f32 = jnp.float32
    x = x_ref[...]        # [Rp, DP]  fused node features
    adj = adj_ref[...]    # [Rp, Rp]  block-diagonal normalized adjacency
    pool = pool_ref[...]  # [Gp, Rp]  block-diagonal mean-pool matrix

    # conv: relu( Â @ (X W1) + b1 )      (bf16 weights promote to f32, f32 acc)
    h = jnp.dot(x, w1_ref[...], preferred_element_type=f32)
    h = jnp.dot(adj, h, preferred_element_type=f32) + b1_ref[...]
    h = jnp.maximum(h, 0.0)

    # conv2: relu( Â @ (H W2) + b2 )
    h = jnp.dot(h, w2_ref[...], preferred_element_type=f32)
    h = jnp.dot(adj, h, preferred_element_type=f32) + b2_ref[...]
    h = jnp.maximum(h, 0.0)

    # global_mean_pool for every problem at once: [Gp, Rp] @ [Rp, DP]
    z = jnp.dot(pool, h, preferred_element_type=f32)

    # MLP head
    z = jnp.maximum(jnp.dot(z, wl1_ref[...], preferred_element_type=f32) + bl1_ref[...], 0.0)
    z = jnp.maximum(jnp.dot(z, wl2_ref[...], preferred_element_type=f32) + bl2_ref[...], 0.0)
    z = jnp.maximum(jnp.dot(z, wl22_ref[...], preferred_element_type=f32) + bl22_ref[...], 0.0)
    z = jnp.maximum(jnp.dot(z, wl23_ref[...], preferred_element_type=f32) + bl23_ref[...], 0.0)
    # One lane-dense [Gp, DP] store per step.
    out_ref[...] = jnp.dot(z, wl3_ref[...], preferred_element_type=f32) + bl3_ref[...]


# ----------------------------------------------------------------------------
# Graph preprocessing — once per topology, hoisted off the per-call path.
# ----------------------------------------------------------------------------
def gcn_norm_adj(edge_index, num_nodes):
    """Dense symmetric-normalized adjacency with self-loops (PyG gcn_norm)."""
    src, tgt = edge_index[0], edge_index[1]
    a = jnp.zeros((num_nodes, num_nodes), jnp.float32).at[tgt, src].add(1.0)
    a = a + jnp.eye(num_nodes, dtype=jnp.float32)
    deg = a.sum(axis=1)
    dinv = jnp.where(deg > 0, 1.0 / jnp.sqrt(deg), 0.0)
    return dinv[:, None] * a * dinv[None, :]


def mean_pool_matrix(batch_vector, num_graphs):
    onehot = (batch_vector[None, :] == jnp.arange(num_graphs)[:, None]).astype(jnp.float32)
    counts = onehot.sum(axis=1, keepdims=True)
    return onehot / jnp.maximum(counts, 1.0)


def _block_diag(mats):
    """[Bs, n, m] -> [Bs*n, Bs*m] block-diagonal."""
    bs, n, m = mats.shape
    out = jnp.zeros((bs, n, bs, m), mats.dtype)
    out = out.at[jnp.arange(bs), :, jnp.arange(bs), :].set(mats)
    return out.reshape(bs * n, bs * m)


def build_fused_graph_ops(adj, pool, steps):
    """adj [B,N,N], pool [B,G,N]  ->  padded block-diag slabs
       adj_bd [steps, Rp, Rp], pool_bd [steps, Gp, Rp]  (f32, zero-padded)."""
    B, N, _ = adj.shape
    G = pool.shape[1]
    assert B % steps == 0
    bs = B // steps
    rn, rg = bs * N, bs * G
    Rp, Gp = _round_up(rn, SUBLANE), _round_up(rg, SUBLANE)

    adj_bd = jax.vmap(_block_diag)(adj.reshape(steps, bs, N, N))
    pool_bd = jax.vmap(_block_diag)(pool.reshape(steps, bs, G, N))

    adj_p = jnp.zeros((steps, Rp, Rp), jnp.float32).at[:, :rn, :rn].set(adj_bd)
    pool_p = jnp.zeros((steps, Gp, Rp), jnp.float32).at[:, :rg, :rn].set(pool_bd)
    return adj_p, pool_p


# ----------------------------------------------------------------------------
# Parameters
# ----------------------------------------------------------------------------
def init_params(key, D):
    shapes = [
        ("w1", (D, 2 * D)), ("b1", (1, 2 * D)),
        ("w2", (2 * D, D)), ("b2", (1, D)),
        ("wl1", (D, D)), ("bl1", (1, D)),
        ("wl2", (D, 8 * D)), ("bl2", (1, 8 * D)),
        ("wl22", (8 * D, 8 * D)), ("bl22", (1, 8 * D)),
        ("wl23", (8 * D, 8 * D)), ("bl23", (1, 8 * D)),
        ("wl3", (8 * D, D)), ("bl3", (1, D)),
    ]
    params = {}
    keys = jax.random.split(key, len(shapes))
    for k, (name, shp) in zip(keys, shapes):
        fan_in = shp[0] if shp[0] > 1 else shp[-1]
        params[name] = jax.random.normal(k, shp, jnp.float32) / jnp.sqrt(float(fan_in))
    return params


def pad_params(params, D):
    """Zero-pad to lane-dense shapes. Weights stored bf16 (halves weight DMA),
    biases kept f32 (tiny, exact). Done once."""
    DP, D2P, D8P = _round_up(D, LANE), _round_up(2 * D, LANE), _round_up(8 * D, LANE)

    def pad(name, r, c, dtype):
        w = params[name]
        out = jnp.zeros((r, c), jnp.float32).at[: w.shape[0], : w.shape[1]].set(w)
        return out.astype(dtype)

    bf, f32 = jnp.bfloat16, jnp.float32
    return {
        "w1": pad("w1", DP, D2P, bf), "b1": pad("b1", 1, D2P, f32),
        "w2": pad("w2", D2P, DP, bf), "b2": pad("b2", 1, DP, f32),
        "wl1": pad("wl1", DP, DP, bf), "bl1": pad("bl1", 1, DP, f32),
        "wl2": pad("wl2", DP, D8P, bf), "bl2": pad("bl2", 1, D8P, f32),
        "wl22": pad("wl22", D8P, D8P, bf), "bl22": pad("bl22", 1, D8P, f32),
        "wl23": pad("wl23", D8P, D8P, bf), "bl23": pad("bl23", 1, D8P, f32),
        "wl3": pad("wl3", D8P, DP, bf), "bl3": pad("bl3", 1, DP, f32),
    }


# ----------------------------------------------------------------------------
# Forward: x [B,N,D] + pre-fused graph operators -> [B, G*D]
# ----------------------------------------------------------------------------
@functools.partial(jax.jit, static_argnames=("num_graphs",))
def pattern_encoder_forward(x, adj_bd, pool_bd, padded, *, num_graphs):
    B, N, D = x.shape
    G = num_graphs
    steps, Rp, _ = adj_bd.shape
    Gp = pool_bd.shape[1]
    assert B % steps == 0
    bs = B // steps

    DP, D2P = padded["w1"].shape
    D8P = padded["wl2"].shape[1]

    # Only x needs per-call padding (adj/pool are pre-padded per topology).
    xf = jnp.zeros((steps, Rp, DP), jnp.float32).at[:, : bs * N, :D].set(
        x.reshape(steps, bs * N, D))

    def fused(rows, cols):
        return pl.BlockSpec((None, rows, cols), lambda s: (s, 0, 0))

    def resident(rows, cols):
        # Constant block index -> weights stay in VMEM across steps; single
        # buffer (no unused double-buffer copy).
        return pl.BlockSpec((rows, cols), lambda s: (0, 0),
                            pipeline_mode=pl.Buffered(1))

    p = padded
    in_specs = [
        fused(Rp, DP), fused(Rp, Rp), fused(Gp, Rp),
        resident(DP, D2P), resident(1, D2P),
        resident(D2P, DP), resident(1, DP),
        resident(DP, DP), resident(1, DP),
        resident(DP, D8P), resident(1, D8P),
        resident(D8P, D8P), resident(1, D8P),
        resident(D8P, D8P), resident(1, D8P),
        resident(D8P, DP), resident(1, DP),
    ]

    flops = 2 * steps * (
        Rp * DP * D2P + Rp * Rp * D2P          # conv
        + Rp * D2P * DP + Rp * Rp * DP         # conv2
        + Gp * Rp * DP                         # pool
        + Gp * (DP * DP + DP * D8P + 2 * D8P * D8P + D8P * DP))
    weight_bytes = sum(int(v.size) * v.dtype.itemsize for v in padded.values())
    act_bytes = 4 * steps * (Rp * DP + Rp * Rp + Gp * Rp + Gp * DP)
    cost = pl.CostEstimate(flops=int(flops), transcendentals=0,
                           bytes_accessed=int(weight_bytes + act_bytes))

    out = pl.pallas_call(
        pattern_encoder_kernel,
        out_shape=jax.ShapeDtypeStruct((steps, Gp, DP), jnp.float32),
        grid=(steps,),
        in_specs=in_specs,
        out_specs=fused(Gp, DP),
        compiler_params=pltpu.CompilerParams(
            dimension_semantics=("parallel",),   # 2 fat steps -> both v7x TCs
        ),
        cost_estimate=cost,
    )(
        xf, adj_bd, pool_bd,
        p["w1"], p["b1"], p["w2"], p["b2"],
        p["wl1"], p["bl1"], p["wl2"], p["bl2"],
        p["wl22"], p["bl22"], p["wl23"], p["bl23"],
        p["wl3"], p["bl3"],
    )

    # torch.squeeze(x); x.flatten()  (per problem)
    return out[:, : bs * G, :D].reshape(B, G * D)


# ----------------------------------------------------------------------------
# Pure-JAX reference (unpadded). Weights are bf16-rounded exactly as stored for
# the kernel so the comparison isolates layout/kernel errors from the cast.
# ----------------------------------------------------------------------------
def reference_forward(x, adj, pool, params):
    def r(name):
        return params[name].astype(jnp.bfloat16).astype(jnp.float32)

    def one(xb, ab, pb):
        h = jnp.maximum(ab @ (xb @ r("w1")) + params["b1"], 0.0)
        h = jnp.maximum(ab @ (h @ r("w2")) + params["b2"], 0.0)
        z = pb @ h
        z = jnp.maximum(z @ r("wl1") + params["bl1"], 0.0)
        z = jnp.maximum(z @ r("wl2") + params["bl2"], 0.0)
        z = jnp.maximum(z @ r("wl22") + params["bl22"], 0.0)
        z = jnp.maximum(z @ r("wl23") + params["bl23"], 0.0)
        z = z @ r("wl3") + params["bl3"]
        return z.reshape(-1)

    return jax.vmap(one)(x, adj, pool)


if __name__ == "__main__":
    LATENT_SIZE = 28
    D = LATENT_SIZE + 4        # extended_lat_size = 32
    G = 2                      # graphs per problem
    NODES_PER_GRAPH = 8
    N = G * NODES_PER_GRAPH    # 16 nodes per problem
    B = 16                     # problems; fused -> 128 node rows per step
    STEPS = 2                  # 2 fat grid steps (one per v7x TensorCore)

    key = jax.random.PRNGKey(0)
    kx, kp = jax.random.split(key)

    # node features [B, N, D]
    x = jax.random.normal(kx, (B, N, D), jnp.float32)

    # deterministic bidirectional ring edges within each graph
    src_list, tgt_list = [], []
    for g in range(G):
        base = g * NODES_PER_GRAPH
        for i in range(NODES_PER_GRAPH):
            a = base + i
            b = base + (i + 1) % NODES_PER_GRAPH
            src_list += [a, b]
            tgt_list += [b, a]
    edge_index = jnp.array([src_list, tgt_list], dtype=jnp.int32)
    batch_vector = jnp.repeat(jnp.arange(G, dtype=jnp.int32), NODES_PER_GRAPH)

    # Once-per-topology preprocessing (normalized Â, mean-pool, block-diag fuse,
    # zero padding) — all hoisted off the per-call path.
    adj_single = gcn_norm_adj(edge_index, N)          # [N, N]
    pool_single = mean_pool_matrix(batch_vector, G)   # [G, N]
    adj = jnp.tile(adj_single[None], (B, 1, 1))
    pool = jnp.tile(pool_single[None], (B, 1, 1))
    adj_bd, pool_bd = build_fused_graph_ops(adj, pool, STEPS)

    params = init_params(kp, D)
    padded = pad_params(params, D)                    # lane-dense, bf16, once

    out = pattern_encoder_forward(x, adj_bd, pool_bd, padded, num_graphs=G)
    jax.block_until_ready(out)
    assert out.shape == (B, G * D)

    ref = reference_forward(x, adj, pool, params)
    # Tolerance covers bf16 weight storage + MXU precision/accumulation order.
    assert jnp.allclose(out, ref, rtol=2e-2, atol=2e-2), "mismatch vs reference"

    print("KERNEL_OK")
</pallas_src>

<mosaic_0001>
module attributes {stable_mosaic.version = 11 : i64} {
  func.func @pattern_encoder_kernel(%arg0: i32, %arg1: memref<1x128x128xf32, #tpu.memory_space<vmem>>, %arg2: memref<1x128x128xf32, #tpu.memory_space<vmem>>, %arg3: memref<1x16x128xf32, #tpu.memory_space<vmem>>, %arg4: memref<128x128xbf16, #tpu.memory_space<vmem>>, %arg5: memref<1x128xf32, #tpu.memory_space<vmem>>, %arg6: memref<128x128xbf16, #tpu.memory_space<vmem>>, %arg7: memref<1x128xf32, #tpu.memory_space<vmem>>, %arg8: memref<128x128xbf16, #tpu.memory_space<vmem>>, %arg9: memref<1x128xf32, #tpu.memory_space<vmem>>, %arg10: memref<128x256xbf16, #tpu.memory_space<vmem>>, %arg11: memref<1x256xf32, #tpu.memory_space<vmem>>, %arg12: memref<256x256xbf16, #tpu.memory_space<vmem>>, %arg13: memref<1x256xf32, #tpu.memory_space<vmem>>, %arg14: memref<256x256xbf16, #tpu.memory_space<vmem>>, %arg15: memref<1x256xf32, #tpu.memory_space<vmem>>, %arg16: memref<256x128xbf16, #tpu.memory_space<vmem>>, %arg17: memref<1x128xf32, #tpu.memory_space<vmem>>, %arg18: memref<1x16x128xf32, #tpu.memory_space<vmem>>) attributes {dimension_semantics = [#tpu.dimension_semantics<parallel>], iteration_bounds = array<i64: 2>, scalar_prefetch = 0 : i64, scratch_operands = 0 : i64, tpu.core_type = #tpu.core_type<tc>, window_params = [{transform_indices = @transform_0, window_bounds = array<i64: 1, 128, 128>}, {transform_indices = @transform_1, window_bounds = array<i64: 1, 128, 128>}, {transform_indices = @transform_2, window_bounds = array<i64: 1, 16, 128>}, {pipeline_mode = #tpu.pipeline_mode<synchronous>, transform_indices = @transform_3, window_bounds = array<i64: 128, 128>}, {pipeline_mode = #tpu.pipeline_mode<synchronous>, transform_indices = @transform_4, window_bounds = array<i64: 1, 128>}, {pipeline_mode = #tpu.pipeline_mode<synchronous>, transform_indices = @transform_5, window_bounds = array<i64: 128, 128>}, {pipeline_mode = #tpu.pipeline_mode<synchronous>, transform_indices = @transform_6, window_bounds = array<i64: 1, 128>}, {pipeline_mode = #tpu.pipeline_mode<synchronous>, transform_indices = @transform_7, window_bounds = array<i64: 128, 128>}, {pipeline_mode = #tpu.pipeline_mode<synchronous>, transform_indices = @transform_8, window_bounds = array<i64: 1, 128>}, {pipeline_mode = #tpu.pipeline_mode<synchronous>, transform_indices = @transform_9, window_bounds = array<i64: 128, 256>}, {pipeline_mode = #tpu.pipeline_mode<synchronous>, transform_indices = @transform_10, window_bounds = array<i64: 1, 256>}, {pipeline_mode = #tpu.pipeline_mode<synchronous>, transform_indices = @transform_11, window_bounds = array<i64: 256, 256>}, {pipeline_mode = #tpu.pipeline_mode<synchronous>, transform_indices = @transform_12, window_bounds = array<i64: 1, 256>}, {pipeline_mode = #tpu.pipeline_mode<synchronous>, transform_indices = @transform_13, window_bounds = array<i64: 256, 256>}, {pipeline_mode = #tpu.pipeline_mode<synchronous>, transform_indices = @transform_14, window_bounds = array<i64: 1, 256>}, {pipeline_mode = #tpu.pipeline_mode<synchronous>, transform_indices = @transform_15, window_bounds = array<i64: 256, 128>}, {pipeline_mode = #tpu.pipeline_mode<synchronous>, transform_indices = @transform_16, window_bounds = array<i64: 1, 128>}, {transform_indices = @transform_17, window_bounds = array<i64: 1, 16, 128>}]} {
    %c0 = arith.constant 0 : index
    %c0_0 = arith.constant 0 : index
    %c0_1 = arith.constant 0 : index
    %0 = vector.load %arg1[%c0, %c0_0, %c0_1] : memref<1x128x128xf32, #tpu.memory_space<vmem>>, vector<1x128x128xf32>
    %1 = vector.shape_cast %0 : vector<1x128x128xf32> to vector<128x128xf32>
    %c0_2 = arith.constant 0 : index
    %c0_3 = arith.constant 0 : index
    %c0_4 = arith.constant 0 : index
    %2 = vector.load %arg2[%c0_2, %c0_3, %c0_4] : memref<1x128x128xf32, #tpu.memory_space<vmem>>, vector<1x128x128xf32>
    %3 = vector.shape_cast %2 : vector<1x128x128xf32> to vector<128x128xf32>
    %c0_5 = arith.constant 0 : index
    %c0_6 = arith.constant 0 : index
    %c0_7 = arith.constant 0 : index
    %4 = vector.load %arg3[%c0_5, %c0_6, %c0_7] : memref<1x16x128xf32, #tpu.memory_space<vmem>>, vector<1x16x128xf32>
    %5 = vector.shape_cast %4 : vector<1x16x128xf32> to vector<16x128xf32>
    %c0_8 = arith.constant 0 : index
    %c0_9 = arith.constant 0 : index
    %6 = vector.load %arg4[%c0_8, %c0_9] : memref<128x128xbf16, #tpu.memory_space<vmem>>, vector<128x128xbf16>
    %cst = arith.constant dense<0.000000e+00> : vector<128x128xf32>
    %7 = tpu.matmul %1, %6, %cst {dimension_numbers = #tpu.dot_dimension_numbers<[1], [0], [0], [1], [0, 0, 1, 1], [], []>} : vector<128x128xf32>, vector<128x128xbf16>, vector<128x128xf32> -> vector<128x128xf32>
    %cst_10 = arith.constant dense<0.000000e+00> : vector<128x128xf32>
    %8 = tpu.matmul %3, %7, %cst_10 {dimension_numbers = #tpu.dot_dimension_numbers<[1], [0], [0], [1], [0, 0, 1, 1], [], []>} : vector<128x128xf32>, vector<128x128xf32>, vector<128x128xf32> -> vector<128x128xf32>
    %c0_11 = arith.constant 0 : index
    %c0_12 = arith.constant 0 : index
    %9 = vector.load %arg5[%c0_11, %c0_12] : memref<1x128xf32, #tpu.memory_space<vmem>>, vector<1x128xf32>
    %10 = vector.broadcast %9 : vector<1x128xf32> to vector<128x128xf32>
    %11 = arith.addf %8, %10 : vector<128x128xf32>
    %cst_13 = arith.constant 0.000000e+00 : f32
    %12 = vector.broadcast %cst_13 : f32 to vector<128x128xf32>
    %13 = arith.maximumf %11, %12 : vector<128x128xf32>
    %c0_14 = arith.constant 0 : index
    %c0_15 = arith.constant 0 : index
    %14 = vector.load %arg6[%c0_14, %c0_15] : memref<128x128xbf16, #tpu.memory_space<vmem>>, vector<128x128xbf16>
    %cst_16 = arith.constant dense<0.000000e+00> : vector<128x128xf32>
    %15 = tpu.matmul %13, %14, %cst_16 {dimension_numbers = #tpu.dot_dimension_numbers<[1], [0], [0], [1], [0, 0, 1, 1], [], []>} : vector<128x128xf32>, vector<128x128xbf16>, vector<128x128xf32> -> vector<128x128xf32>
    %cst_17 = arith.constant dense<0.000000e+00> : vector<128x128xf32>
    %16 = tpu.matmul %3, %15, %cst_17 {dimension_numbers = #tpu.dot_dimension_numbers<[1], [0], [0], [1], [0, 0, 1, 1], [], []>} : vector<128x128xf32>, vector<128x128xf32>, vector<128x128xf32> -> vector<128x128xf32>
    %c0_18 = arith.constant 0 : index
    %c0_19 = arith.constant 0 : index
    %17 = vector.load %arg7[%c0_18, %c0_19] : memref<1x128xf32, #tpu.memory_space<vmem>>, vector<1x128xf32>
    %18 = vector.broadcast %17 : vector<1x128xf32> to vector<128x128xf32>
    %19 = arith.addf %16, %18 : vector<128x128xf32>
    %cst_20 = arith.constant 0.000000e+00 : f32
    %20 = vector.broadcast %cst_20 : f32 to vector<128x128xf32>
    %21 = arith.maximumf %19, %20 : vector<128x128xf32>
    %cst_21 = arith.constant dense<0.000000e+00> : vector<16x128xf32>
    %22 = tpu.matmul %5, %21, %cst_21 {dimension_numbers = #tpu.dot_dimension_numbers<[1], [0], [0], [1], [0, 0, 1, 1], [], []>} : vector<16x128xf32>, vector<128x128xf32>, vector<16x128xf32> -> vector<16x128xf32>
    %c0_22 = arith.constant 0 : index
    %c0_23 = arith.constant 0 : index
    %23 = vector.load %arg8[%c0_22, %c0_23] : memref<128x128xbf16, #tpu.memory_space<vmem>>, vector<128x128xbf16>
    %cst_24 = arith.constant dense<0.000000e+00> : vector<16x128xf32>
    %24 = tpu.matmul %22, %23, %cst_24 {dimension_numbers = #tpu.dot_dimension_numbers<[1], [0], [0], [1], [0, 0, 1, 1], [], []>} : vector<16x128xf32>, vector<128x128xbf16>, vector<16x128xf32> -> vector<16x128xf32>
    %c0_25 = arith.constant 0 : index
    %c0_26 = arith.constant 0 : index
    %25 = vector.load %arg9[%c0_25, %c0_26] : memref<1x128xf32, #tpu.memory_space<vmem>>, vector<1x128xf32>
    %26 = vector.broadcast %25 : vector<1x128xf32> to vector<16x128xf32>
    %27 = arith.addf %24, %26 : vector<16x128xf32>
    %cst_27 = arith.constant 0.000000e+00 : f32
    %28 = vector.broadcast %cst_27 : f32 to vector<16x128xf32>
    %29 = arith.maximumf %27, %28 : vector<16x128xf32>
    %c0_28 = arith.constant 0 : index
    %c0_29 = arith.constant 0 : index
    %30 = vector.load %arg10[%c0_28, %c0_29] : memref<128x256xbf16, #tpu.memory_space<vmem>>, vector<128x256xbf16>
    %cst_30 = arith.constant dense<0.000000e+00> : vector<16x256xf32>
    %31 = tpu.matmul %29, %30, %cst_30 {dimension_numbers = #tpu.dot_dimension_numbers<[1], [0], [0], [1], [0, 0, 1, 1], [], []>} : vector<16x128xf32>, vector<128x256xbf16>, vector<16x256xf32> -> vector<16x256xf32>
    %c0_31 = arith.constant 0 : index
    %c0_32 = arith.constant 0 : index
    %32 = vector.load %arg11[%c0_31, %c0_32] : memref<1x256xf32, #tpu.memory_space<vmem>>, vector<1x256xf32>
    %33 = vector.broadcast %32 : vector<1x256xf32> to vector<16x256xf32>
    %34 = arith.addf %31, %33 : vector<16x256xf32>
    %cst_33 = arith.constant 0.000000e+00 : f32
    %35 = vector.broadcast %cst_33 : f32 to vector<16x256xf32>
    %36 = arith.maximumf %34, %35 : vector<16x256xf32>
    %c0_34 = arith.constant 0 : index
    %c0_35 = arith.constant 0 : index
    %37 = vector.load %arg12[%c0_34, %c0_35] : memref<256x256xbf16, #tpu.memory_space<vmem>>, vector<256x256xbf16>
    %cst_36 = arith.constant dense<0.000000e+00> : vector<16x256xf32>
    %38 = tpu.matmul %36, %37, %cst_36 {dimension_numbers = #tpu.dot_dimension_numbers<[1], [0], [0], [1], [0, 0, 1, 1], [], []>} : vector<16x256xf32>, vector<256x256xbf16>, vector<16x256xf32> -> vector<16x256xf32>
    %c0_37 = arith.constant 0 : index
    %c0_38 = arith.constant 0 : index
    %39 = vector.load %arg13[%c0_37, %c0_38] : memref<1x256xf32, #tpu.memory_space<vmem>>, vector<1x256xf32>
    %40 = vector.broadcast %39 : vector<1x256xf32> to vector<16x256xf32>
    %41 = arith.addf %38, %40 : vector<16x256xf32>
    %cst_39 = arith.constant 0.000000e+00 : f32
    %42 = vector.broadcast %cst_39 : f32 to vector<16x256xf32>
    %43 = arith.maximumf %41, %42 : vector<16x256xf32>
    %c0_40 = arith.constant 0 : index
    %c0_41 = arith.constant 0 : index
    %44 = vector.load %arg14[%c0_40, %c0_41] : memref<256x256xbf16, #tpu.memory_space<vmem>>, vector<256x256xbf16>
    %cst_42 = arith.constant dense<0.000000e+00> : vector<16x256xf32>
    %45 = tpu.matmul %43, %44, %cst_42 {dimension_numbers = #tpu.dot_dimension_numbers<[1], [0], [0], [1], [0, 0, 1, 1], [], []>} : vector<16x256xf32>, vector<256x256xbf16>, vector<16x256xf32> -> vector<16x256xf32>
    %c0_43 = arith.constant 0 : index
    %c0_44 = arith.constant 0 : index
    %46 = vector.load %arg15[%c0_43, %c0_44] : memref<1x256xf32, #tpu.memory_space<vmem>>, vector<1x256xf32>
    %47 = vector.broadcast %46 : vector<1x256xf32> to vector<16x256xf32>
    %48 = arith.addf %45, %47 : vector<16x256xf32>
    %cst_45 = arith.constant 0.000000e+00 : f32
    %49 = vector.broadcast %cst_45 : f32 to vector<16x256xf32>
    %50 = arith.maximumf %48, %49 : vector<16x256xf32>
    %c0_46 = arith.constant 0 : index
    %c0_47 = arith.constant 0 : index
    %51 = vector.load %arg16[%c0_46, %c0_47] : memref<256x128xbf16, #tpu.memory_space<vmem>>, vector<256x128xbf16>
    %cst_48 = arith.constant dense<0.000000e+00> : vector<16x128xf32>
    %52 = tpu.matmul %50, %51, %cst_48 {dimension_numbers = #tpu.dot_dimension_numbers<[1], [0], [0], [1], [0, 0, 1, 1], [], []>} : vector<16x256xf32>, vector<256x128xbf16>, vector<16x128xf32> -> vector<16x128xf32>
    %c0_49 = arith.constant 0 : index
    %c0_50 = arith.constant 0 : index
    %53 = vector.load %arg17[%c0_49, %c0_50] : memref<1x128xf32, #tpu.memory_space<vmem>>, vector<1x128xf32>
    %54 = vector.broadcast %53 : vector<1x128xf32> to vector<16x128xf32>
    %55 = arith.addf %52, %54 : vector<16x128xf32>
    %c0_51 = arith.constant 0 : index
    %c0_52 = arith.constant 0 : index
    %c0_53 = arith.constant 0 : index
    %56 = vector.load %arg18[%c0_51, %c0_52, %c0_53] : memref<1x16x128xf32, #tpu.memory_space<vmem>>, vector<1x16x128xf32>
    %57 = vector.shape_cast %56 : vector<1x16x128xf32> to vector<16x128xf32>
    %58 = vector.shape_cast %55 : vector<16x128xf32> to vector<1x16x128xf32>
    tpu.vector_store %arg18[%c0_51, %c0_52, %c0_53], %58 {strides = array<i32>} : memref<1x16x128xf32, #tpu.memory_space<vmem>>, vector<1x16x128xf32>,
    return
  }
  func.func @transform_0(%arg0: i32) -> (i32, i32, i32) {
    %c0_i32 = arith.constant 0 : i32
    %c0_i32_0 = arith.constant 0 : i32
    %c0_i32_1 = arith.constant 0 : i32
    return %arg0, %c0_i32, %c0_i32_0 : i32, i32, i32
  }
  func.func @transform_1(%arg0: i32) -> (i32, i32, i32) {
    %c0_i32 = arith.constant 0 : i32
    %c0_i32_0 = arith.constant 0 : i32
    %c0_i32_1 = arith.constant 0 : i32
    return %arg0, %c0_i32, %c0_i32_0 : i32, i32, i32
  }
  func.func @transform_2(%arg0: i32) -> (i32, i32, i32) {
    %c0_i32 = arith.constant 0 : i32
    %c0_i32_0 = arith.constant 0 : i32
    %c0_i32_1 = arith.constant 0 : i32
    return %arg0, %c0_i32, %c0_i32_0 : i32, i32, i32
  }
  func.func @transform_3(%arg0: i32) -> (i32, i32) {
    %c0_i32 = arith.constant 0 : i32
    %c0_i32_0 = arith.constant 0 : i32
    %c0_i32_1 = arith.constant 0 : i32
    return %c0_i32, %c0_i32_0 : i32, i32
  }
  func.func @transform_4(%arg0: i32) -> (i32, i32) {
    %c0_i32 = arith.constant 0 : i32
    %c0_i32_0 = arith.constant 0 : i32
    %c0_i32_1 = arith.constant 0 : i32
    return %c0_i32, %c0_i32_0 : i32, i32
  }
  func.func @transform_5(%arg0: i32) -> (i32, i32) {
    %c0_i32 = arith.constant 0 : i32
    %c0_i32_0 = arith.constant 0 : i32
    %c0_i32_1 = arith.constant 0 : i32
    return %c0_i32, %c0_i32_0 : i32, i32
  }
  func.func @transform_6(%arg0: i32) -> (i32, i32) {
    %c0_i32 = arith.constant 0 : i32
    %c0_i32_0 = arith.constant 0 : i32
    %c0_i32_1 = arith.constant 0 : i32
    return %c0_i32, %c0_i32_0 : i32, i32
  }
  func.func @transform_7(%arg0: i32) -> (i32, i32) {
    %c0_i32 = arith.constant 0 : i32
    %c0_i32_0 = arith.constant 0 : i32
    %c0_i32_1 = arith.constant 0 : i32
    return %c0_i32, %c0_i32_0 : i32, i32
  }
  func.func @transform_8(%arg0: i32) -> (i32, i32) {
    %c0_i32 = arith.constant 0 : i32
    %c0_i32_0 = arith.constant 0 : i32
    %c0_i32_1 = arith.constant 0 : i32
    return %c0_i32, %c0_i32_0 : i32, i32
  }
  func.func @transform_9(%arg0: i32) -> (i32, i32) {
    %c0_i32 = arith.constant 0 : i32
    %c0_i32_0 = arith.constant 0 : i32
    %c0_i32_1 = arith.constant 0 : i32
    return %c0_i32, %c0_i32_0 : i32, i32
  }
  func.func @transform_10(%arg0: i32) -> (i32, i32) {
    %c0_i32 = arith.constant 0 : i32
    %c0_i32_0 = arith.constant 0 : i32
    %c0_i32_1 = arith.constant 0 : i32
    return %c0_i32, %c0_i32_0 : i32, i32
  }
  func.func @transform_11(%arg0: i32) -> (i32, i32) {
    %c0_i32 = arith.constant 0 : i32
    %c0_i32_0 = arith.constant 0 : i32
    %c0_i32_1 = arith.constant 0 : i32
    return %c0_i32, %c0_i32_0 : i32, i32
  }
  func.func @transform_12(%arg0: i32) -> (i32, i32) {
    %c0_i32 = arith.constant 0 : i32
    %c0_i32_0 = arith.constant 0 : i32
    %c0_i32_1 = arith.constant 0 : i32
    return %c0_i32, %c0_i32_0 : i32, i32
  }
  func.func @transform_13(%arg0: i32) -> (i32, i32) {
    %c0_i32 = arith.constant 0 : i32
    %c0_i32_0 = arith.constant 0 : i32
    %c0_i32_1 = arith.constant 0 : i32
    return %c0_i32, %c0_i32_0 : i32, i32
  }
  func.func @transform_14(%arg0: i32) -> (i32, i32) {
    %c0_i32 = arith.constant 0 : i32
    %c0_i32_0 = arith.constant 0 : i32
    %c0_i32_1 = arith.constant 0 : i32
    return %c0_i32, %c0_i32_0 : i32, i32
  }
  func.func @transform_15(%arg0: i32) -> (i32, i32) {
    %c0_i32 = arith.constant 0 : i32
    %c0_i32_0 = arith.constant 0 : i32
    %c0_i32_1 = arith.constant 0 : i32
    return %c0_i32, %c0_i32_0 : i32, i32
  }
  func.func @transform_16(%arg0: i32) -> (i32, i32) {
    %c0_i32 = arith.constant 0 : i32
    %c0_i32_0 = arith.constant 0 : i32
    %c0_i32_1 = arith.constant 0 : i32
    return %c0_i32, %c0_i32_0 : i32, i32
  }
  func.func @transform_17(%arg0: i32) -> (i32, i32, i32) {
    %c0_i32 = arith.constant 0 : i32
    %c0_i32_0 = arith.constant 0 : i32
    %c0_i32_1 = arith.constant 0 : i32
    return %arg0, %c0_i32, %c0_i32_0 : i32, i32, i32
  }
}

</mosaic_0001>

<bundles_post_ra>
// kernel: pattern_encoder_forward.1
= control target key start
LH: loop header
LB: loop body
LE: loop exit
PB: predicated region body
PF: predicated region fallthrough
CT: control target
= control target key end

     0   :  { %s4433_s0 = inlined_call_operand.vmem [shape: f32[2,128,128], index: 0, kind: input, shape index: {}]   ;;  %s4434_s1 = inlined_call_operand.vmem [shape: f32[2,128,128], index: 1, kind: input, shape index: {}]   ;;  %s4435_s2 = inlined_call_operand.hbm [shape: f32[2,16,128], index: 2, kind: input, shape index: {}]   ;;  %s4436_s3 = inlined_call_operand.hbm [shape: bf16[128,128], index: 3, kind: input, shape index: {}]   ;;  %s4437_s4 = inlined_call_operand.vmem [shape: f32[1,128], index: 4, kind: input, shape index: {}]   ;;  %s4438_s5 = inlined_call_operand.hbm [shape: bf16[128,128], index: 5, kind: input, shape index: {}]   ;;  %s4439_s6 = inlined_call_operand.vmem [shape: f32[1,128], index: 6, kind: input, shape index: {}]   ;;  %s4440_s7 = inlined_call_operand.hbm [shape: bf16[128,128], index: 7, kind: input, shape index: {}]   ;;  %s4441_s8 = inlined_call_operand.vmem [shape: f32[1,128], index: 8, kind: input, shape index: {}]   ;;  %s4442_s9 = inlined_call_operand.hbm [shape: bf16[128,256], index: 9, kind: input, shape index: {}]   ;;  %s4443_s10 = inlined_call_operand.vmem [shape: f32[1,256], index: 10, kind: input, shape index: {}]   ;;  %s4444_s11 = inlined_call_operand.vmem [shape: bf16[256,256], index: 11, kind: input, shape index: {}]   ;;  %s4445_s12 = inlined_call_operand.vmem [shape: f32[1,256], index: 12, kind: input, shape index: {}]   ;;  %s4446_s13 = inlined_call_operand.hbm [shape: bf16[256,256], index: 13, kind: input, shape index: {}]   ;;  %s4447_s14 = inlined_call_operand.vmem [shape: f32[1,256], index: 14, kind: input, shape index: {}]   ;;  %s4448_s15 = inlined_call_operand.hbm [shape: bf16[256,128], index: 15, kind: input, shape index: {}]   ;;  %s4449_s16 = inlined_call_operand.vmem [shape: f32[1,128], index: 16, kind: input, shape index: {}]   ;;  %s4450_s17 = inlined_call_operand.vmem [shape: f32[2,16,128], index: 17, kind: output, shape index: {}]  }
   0x1   :  { %4458 = sst [smem:[#allocation17_spill]] %s4433_s0 }
   0x2   :  { %4459 = sst [smem:[#allocation18_spill]] %s4434_s1 }
   0x3   :  { %4460 = sst [smem:[#allocation19_spill]] %s4436_s3 }
   0x4   :  { %4461 = sst [smem:[#allocation20_spill]] %s4440_s7 }
   0x5   :  { %4462 = sst [smem:[#allocation21_spill]] %s4441_s8 }
   0x6   :  { %4463 = sst [smem:[#allocation22_spill]] %s4443_s10 }
   0x7   :  { %4464 = sst [smem:[#allocation23_spill]] %s4444_s11 }
   0x8   :  { %4465 = sst [smem:[#allocation24_spill]] %s4445_s12 }
   0x9   :  { %4466 = sst [smem:[#allocation25_spill]] %s4447_s14 }
   0xa   :  { %4467 = sst [smem:[#allocation26_spill]] %s4449_s16 }
   0xb   :  { %4468 = sst [smem:[#allocation27_spill]] %s4450_s17 }
   0xc   :  { %22 = vsyncpa [#allocation3], 0 }
   0xd   :  { %24 = vsyncpa [#allocation3 + $0x1], 0 }
   0xe   :  { %25 = vsyncpa [#allocation5], 0 }
   0xf   :  { %26 = vsyncpa [#allocation8], 0 }
  0x10   :  { %27 = vsyncpa [#allocation11], 0  ;;  %s3876_s24 = smov 0   ;;  %s3878_s25 = smov 0  }
  0x11   :  { %s3880_s26 = smov 0   ;;  %s3882_s27 = smov 0  }
  0x12 LB: > { %s3774_s28 = smov [#allocation4]   ;;  %s3897_s0 = sadd.s32 4294967295, %s3772_s27   ;;  %s3772_s27 = sphi %s3882_s27, %s4499_s27   ;;  %s3768_s26 = sphi %s3880_s26, %s4498_s26   ;;  %s3764_s25 = sphi %s3878_s25, %s4497_s25   ;;  %s3760_s24 = sphi %s3876_s24, %s4496_s24  }
  0x13   : > { %s448_s29 = sshll.u32 %s3774_s28, 4  ;;  %p2604_p0 = scmp.ge.s32.totalorder %s3772_s27, 1  ;;  %s3902_s29 = int_to_ptr.vmem [resolvable:$true] %s448_s29 }
  0x14   : > { %p4452_p1 = scmp.eq.s32.totalorder %s3897_s0, 0  ;;  %p436_p2 = scmp.lt.s32.totalorder %s3772_s27, 3 }
  0x15   : > { %s3775_s18 = smov [#allocation7]   ;;  %s3776_s20 = smov [#allocation10]  }
  0x16   : > { %p3904_p3 = pnand %p2604_p0, %p436_p2  ;;  %s480_s19 = sshll.u32 %s3775_s18, 4  ;;  %s3916_s19 = int_to_ptr.vmem [resolvable:$true] %s480_s19 }
  0x17   : > { %s3918_s21 = sshll.u32 %s3776_s20, 4  ;;  %s4471_s3 = sld [smem:[#allocation19_spill]]  ;;  %s519_s21 = int_to_ptr.vmem [resolvable:$true] %s3918_s21 }
  0x18   : > { %s4469_s30 = scalar_select %p3904_p3, 1, 0 }
  0x19   : > { %p3289_p4 = pneg %p3904_p3 }
  0x1b   : > { %p3912_p5 = pnand %p3289_p4, %p4452_p1 }
  0x1d   : > { %s3528_s28 = scalar_lea.hbm %s4471_s3, 1024  ;;  %p3928_p7 = pneg %p3912_p5 }
  0x1e   : > { %p3529_p6 = scmp.ne.s32.totalorder %s4471_s3, %s3528_s28  ;;  %p3535_p10 = scmp.lt.u32.totalorder %s3528_s28, %s4471_s3 }
  0x20   : > { %p3531_p8 = pnand %p3928_p7, %p3529_p6 }
  0x22   : > { %p3532_p9 = pneg %p3531_p8 }
  0x24   : > { %p3537_p11 = pnand %p3535_p10, %p3532_p9 }
  0x26   : > { %3540 = shalt.err (!%p3537_p11)
}
  0x27   : > { %s3541_s16 = scalar_lea.vmem %s3902_s29, 1024  ;;  %p3549_p2 = scmp.lt.s32.totalorder %s3902_s29, %s3902_s29 }
  0x28   : > { %p3542_p12 = scmp.ne.s32.totalorder %s3902_s29, %s3541_s16  ;;  %p3550_p4 = scmp.lt.s32.totalorder %s3541_s16, %s3541_s16 }
  0x2a   : > { %p3544_p13 = pnand %p3542_p12, %p3928_p7  ;;  %p3551_p6 = por %p3550_p4, %p3549_p2 }
  0x2c   : > { %p3545_p0 = pneg %p3544_p13 }
  0x2e   : > { %p3552_p8 = pnand %p3551_p6, %p3545_p0 }
  0x30   : > { %3555 = shalt.err (!%p3552_p8)
}
  0x31   : > { %s4454_s17 = smov 64   ;;  %s4456_s14 = smov 4  }
  0x32   : > { %3292 = dma.hbm_to_vmem [thread:$0]  (!%p3912_p5), %s4471_s3, 1024, %s3902_s29, [#allocation5], %s4454_s17, %s4454_s17, %s4456_s14  }
  0x33   : > { %s4473_s7 = sld [smem:[#allocation20_spill]] }
  0x39   : > { %s3556_s16 = scalar_lea.hbm %s4473_s7, 1024 }
  0x3a   : > { %p3557_p9 = scmp.ne.s32.totalorder %s4473_s7, %s3556_s16  ;;  %p3563_p12 = scmp.lt.u32.totalorder %s3556_s16, %s4473_s7 }
  0x3c   : > { %p3559_p10 = pnand %p3557_p9, %p3928_p7 }
  0x3e   : > { %p3560_p11 = pneg %p3559_p10 }
  0x40   : > { %p3565_p13 = pnand %p3563_p12, %p3560_p11 }
  0x42   : > { %3568 = shalt.err (!%p3565_p13)
}
  0x43   : > { %s3569_s29 = scalar_lea.vmem %s3916_s19, 1024  ;;  %p3577_p6 = scmp.lt.s32.totalorder %s3916_s19, %s3916_s19 }
  0x44   : > { %p3570_p0 = scmp.ne.s32.totalorder %s3916_s19, %s3569_s29  ;;  %p3578_p8 = scmp.lt.s32.totalorder %s3569_s29, %s3569_s29 }
  0x46   : > { %p3572_p2 = pnand %p3570_p0, %p3928_p7  ;;  %p3579_p9 = por %p3578_p8, %p3577_p6 }
  0x48   : > { %p3573_p4 = pneg %p3572_p2 }
  0x4a   : > { %p3580_p10 = pnand %p3579_p9, %p3573_p4 }
  0x4c   : > { %3583 = shalt.err (!%p3580_p10)
}
  0x4d   : > { %3298 = dma.hbm_to_vmem [thread:$0]  (!%p3912_p5), %s4473_s7, 1024, %s3916_s19, [#allocation8], %s4454_s17, %s4454_s17, %s4456_s14  }
  0x4e   : > { %s3584_s22 = scalar_lea.hbm %s4446_s13, 4096 }
  0x4f   : > { %p3585_p11 = scmp.ne.s32.totalorder %s4446_s13, %s3584_s22  ;;  %p3591_p0 = scmp.lt.u32.totalorder %s3584_s22, %s4446_s13 }
  0x51   : > { %p3587_p12 = pnand %p3585_p11, %p3928_p7 }
  0x53   : > { %p3588_p13 = pneg %p3587_p12 }
  0x55   : > { %p3593_p2 = pnand %p3591_p0, %p3588_p13 }
  0x57   : > { %3596 = shalt.err (!%p3593_p2)
}
  0x58   : > { %s3597_s29 = scalar_lea.vmem %s519_s21, 4096  ;;  %p3605_p9 = scmp.lt.s32.totalorder %s519_s21, %s519_s21 }
  0x59   : > { %p3598_p4 = scmp.ne.s32.totalorder %s519_s21, %s3597_s29  ;;  %p3606_p10 = scmp.lt.s32.totalorder %s3597_s29, %s3597_s29 }
  0x5b   : > { %p3600_p6 = pnand %p3598_p4, %p3928_p7  ;;  %p3607_p1 = por %p3606_p10, %p3605_p9 }
  0x5d   : > { %p3601_p8 = pneg %p3600_p6 }
  0x5f   : > { %p3608_p3 = pnand %p3607_p1, %p3601_p8 }
  0x61   : > { %3611 = shalt.err (!%p3608_p3)
}
  0x62   : > { %s3779_s19 = smov 128   ;;  %s3780_s8 = smov 8  }
  0x63   : > { %3304 = dma.hbm_to_vmem [thread:$0]  (!%p3912_p5), %s4446_s13, 4096, %s519_s21, [#allocation11], %s3779_s19, %s3779_s19, %s3780_s8  }
  0x64   : > { %s3781_s12 = smov [#allocation6]   ;;  %s3782_s23 = smov [#allocation9]  }
  0x65   : > { %s464_s22 = sshll.u32 %s3781_s12, 4  ;;  %s496_s28 = sshll.u32 %s3782_s23, 4  ;;  %s465_s22 = int_to_ptr.vmem [resolvable:$true] %s464_s22  ;;  %s497_s28 = int_to_ptr.vmem [resolvable:$true] %s496_s28 }
  0x66   : > { %s3612_s29 = scalar_lea.hbm %s4438_s5, 1024 }
  0x67   : > { %p3613_p1 = scmp.ne.s32.totalorder %s4438_s5, %s3612_s29  ;;  %p3619_p12 = scmp.lt.u32.totalorder %s3612_s29, %s4438_s5 }
  0x69   : > { %p3615_p3 = pnand %p3613_p1, %p3928_p7 }
  0x6b   : > { %p3616_p11 = pneg %p3615_p3 }
  0x6d   : > { %p3621_p13 = pnand %p3619_p12, %p3616_p11 }
  0x6f   : > { %3624 = shalt.err (!%p3621_p13)
}
  0x70   : > { %s3625_s21 = scalar_lea.vmem %s465_s22, 1024  ;;  %p3633_p6 = scmp.lt.s32.totalorder %s465_s22, %s465_s22 }
  0x71   : > { %p3626_p0 = scmp.ne.s32.totalorder %s465_s22, %s3625_s21  ;;  %p3634_p8 = scmp.lt.s32.totalorder %s3625_s21, %s3625_s21 }
  0x73   : > { %p3628_p2 = pnand %p3626_p0, %p3928_p7  ;;  %p3635_p9 = por %p3634_p8, %p3633_p6 }
  0x75   : > { %p3629_p4 = pneg %p3628_p2 }
  0x77   : > { %p3636_p10 = pnand %p3635_p9, %p3629_p4 }
  0x79   : > { %3639 = shalt.err (!%p3636_p10)
}
  0x7a   : > { %s4474_s17 = smov 4   ;;  %s4475_s14 = smov 64  }
  0x7b   : > { %3295 = dma.hbm_to_vmem [thread:$0]  (!%p3912_p5), %s4438_s5, 1024, %s465_s22, [#allocation5], %s4475_s14, %s4475_s14, %s4474_s17  }
  0x7c   : > { %s3640_s12 = scalar_lea.hbm %s4442_s9, 2048 }
  0x7d   : > { %p3641_p1 = scmp.ne.s32.totalorder %s4442_s9, %s3640_s12  ;;  %p3647_p12 = scmp.lt.u32.totalorder %s3640_s12, %s4442_s9 }
  0x7f   : > { %p3643_p3 = pnand %p3641_p1, %p3928_p7 }
  0x81   : > { %p3644_p11 = pneg %p3643_p3 }
  0x83   : > { %p3649_p13 = pnand %p3647_p12, %p3644_p11 }
  0x85   : > { %3652 = shalt.err (!%p3649_p13)
}
  0x86   : > { %s3653_s21 = scalar_lea.vmem %s497_s28, 2048  ;;  %p3661_p6 = scmp.lt.s32.totalorder %s497_s28, %s497_s28 }
  0x87   : > { %p3654_p0 = scmp.ne.s32.totalorder %s497_s28, %s3653_s21  ;;  %p3662_p8 = scmp.lt.s32.totalorder %s3653_s21, %s3653_s21 }
  0x89   : > { %p3656_p2 = pnand %p3654_p0, %p3928_p7  ;;  %p3663_p9 = por %p3662_p8, %p3661_p6 }
  0x8b   : > { %p3657_p4 = pneg %p3656_p2 }
  0x8d   : > { %p3664_p10 = pnand %p3663_p9, %p3657_p4 }
  0x8f   : > { %3667 = shalt.err (!%p3664_p10)
}
  0x90   : > { %3301 = dma.hbm_to_vmem [thread:$0]  (!%p3912_p5), %s4442_s9, 2048, %s497_s28, [#allocation8], %s3779_s19, %s3779_s19, %s3780_s8  }
  0x91   : > { %s3783_s7 = smov [#allocation12]   ;;  %s3668_s23 = scalar_lea.hbm %s4448_s15, 2048 }
  0x92   : > { %s534_s10 = sshll.u32 %s3783_s7, 4  ;;  %p3669_p1 = scmp.ne.s32.totalorder %s4448_s15, %s3668_s23  ;;  %s535_s10 = int_to_ptr.vmem [resolvable:$true] %s534_s10 }
  0x93   : > { %p3675_p12 = scmp.lt.u32.totalorder %s3668_s23, %s4448_s15 }
  0x94   : > { %p3671_p3 = pnand %p3669_p1, %p3928_p7 }
  0x96   : > { %p3672_p11 = pneg %p3671_p3 }
  0x98   : > { %p3677_p13 = pnand %p3675_p12, %p3672_p11 }
  0x9a   : > { %3680 = shalt.err (!%p3677_p13)
}
  0x9b   : > { %s3681_s28 = scalar_lea.vmem %s535_s10, 2048  ;;  %p3689_p6 = scmp.lt.s32.totalorder %s535_s10, %s535_s10 }
  0x9c   : > { %p3682_p0 = scmp.ne.s32.totalorder %s535_s10, %s3681_s28  ;;  %p3690_p8 = scmp.lt.s32.totalorder %s3681_s28, %s3681_s28 }
  0x9e   : > { %p3684_p2 = pnand %p3682_p0, %p3928_p7  ;;  %p3691_p9 = por %p3690_p8, %p3689_p6 }
  0xa0   : > { %p3685_p4 = pneg %p3684_p2 }
  0xa2   : > { %p3692_p10 = pnand %p3691_p9, %p3685_p4 }
  0xa4   : > { %3695 = shalt.err (!%p3692_p10)
}
  0xa5   : > { %3307 = dma.hbm_to_vmem [thread:$0]  (!%p3912_p5), %s4448_s15, 2048, %s535_s10, [#allocation11], %s4475_s14, %s4475_s14, %s4474_s17  }
  0xa6   : > { %s4064_s1 = sadd.s32 1, %s3772_s27   ;;  %s92_s18 = sadd.s32 1, %s3768_s26 }
  0xa7   : > { %s89_s7 = ssub.s32 %s3772_s27, %s4064_s1  ;;  %p99_p7 = scmp.ne.s32.totalorder %s3768_s26, %s3764_s25 }
  0xa8   : > { %p90_p1 = scmp.eq.s32.totalorder %s89_s7, 0  ;;  %p100_p3 = scmp.eq.s32.totalorder %s3772_s27, 0 }
  0xa9   : > { %p105_p11 = scmp.ne.s32.totalorder %s3764_s25, %s3760_s24  ;;  %p3318_p12 = scmp.lt.s32.totalorder %s3772_s27, 2 }
  0xaa   : > { %s4076_s11 = scalar_select %p90_p1, %s3768_s26, %s92_s18  }
  0xab   : > { %p101_p13 = por %p100_p3, %p99_p7  ;;  %p4476_p0 = scmp.eq.s32.totalorder %s3897_s0, 0 }
  0xac   : > { %s567_s23 = sand.u32 1, %s3768_s26   ;;  %s2755_s17 = sshll.u32 %s3772_s27, 8 }
  0xad   : > { %p4080_p2 = por %p4476_p0, %p105_p11  ;;  %s2612_s14 = sshll.u32 %s567_s23, 4 }
  0xae   : > { %s4089_s16 = scalar_lea.hbm %s4435_s2, %s2755_s17  ;;  %s571_s24 = scalar_lea.vmem [#allocation2], %s2612_s14 }
  0xaf   : > { %s578_s29 = sshll.u32 %s571_s24, 4  ;;  %p4091_p5 = pnand %p3318_p12, %p101_p13  ;;  %s4095_s29 = int_to_ptr.vmem [resolvable:$true] %s578_s29 }
  0xb0   : > { %s4097_s27 = scalar_lea.sflag [#allocation3], %s567_s23  ;;  %s3696_s28 = scalar_lea.hbm %s4089_s16, 256 }
  0xb1   : > { %p3697_p4 = scmp.ne.s32.totalorder %s4089_s16, %s3696_s28  ;;  %p3698_p6 = pneg %p4091_p5 }
  0xb2   : > { %s3701_s18 = scalar_lea.hbm %s4435_s2, 512  ;;  %p3702_p10 = scmp.lt.u32.totalorder %s4089_s16, %s4435_s2 }
  0xb3   : > { %p3699_p8 = pnand %p3698_p6, %p3697_p4  ;;  %p3703_p7 = scmp.lt.u32.totalorder %s3701_s18, %s3696_s28 }
  0xb4   : > { %p3705_p3 = scmp.lt.u32.totalorder %s3696_s28, %s4089_s16 }
  0xb5   : > { %p3700_p9 = pneg %p3699_p8  ;;  %p3704_p1 = por %p3703_p7, %p3702_p10 }
  0xb7   : > { %p3706_p11 = por %p3705_p3, %p3704_p1 }
  0xb9   : > { %p3707_p12 = pnand %p3706_p11, %p3700_p9 }
  0xbb   : > { %3710 = shalt.err (!%p3707_p12)
}
  0xbc   : > { %s3711_s23 = scalar_lea.vmem %s4095_s29, 256  ;;  %s3784_s14 = smov [#allocation2]  }
  0xbd   : > { %p3712_p13 = scmp.ne.s32.totalorder %s4095_s29, %s3711_s23  ;;  %s3716_s10 = sshll.u32 %s3784_s14, 4  ;;  %s3717_s10 = int_to_ptr.vmem [resolvable:$false] %s3716_s10 }
  0xbe   : > { %s3718_s20 = scalar_lea.vmem %s3717_s10, 512  ;;  %p3719_p8 = scmp.lt.s32.totalorder %s4095_s29, %s3717_s10 }
  0xbf   : > { %p3714_p0 = pnand %p3712_p13, %p3698_p6  ;;  %p3720_p10 = scmp.lt.s32.totalorder %s3718_s20, %s3711_s23 }
  0xc1   : > { %p3715_p4 = pneg %p3714_p0  ;;  %p3721_p7 = por %p3720_p10, %p3719_p8 }
  0xc3   : > { %p3722_p1 = pnand %p3721_p7, %p3715_p4 }
  0xc5   : > { %3725 = shalt.err (!%p3722_p1)
}
  0xc6   : > { %3311 = dma.hbm_to_vmem [thread:$0]  (!%p4091_p5), %s4089_s16, 256, %s4095_s29, %s4097_s27, %s3779_s19, %s3779_s19, %s3780_s8  }
  0xc7   : > { %p4479_p6 = scmp.ne.s32.totalorder %s4469_s30, 0 }
  0xc8   : > { %s592_s24 = sand.u32 (!%p4479_p6), 1, %s3764_s25  }
  0xc9   : > { %590 = sbr.rel (%p4479_p6) target bundleno = 2522 (0x9da), region = 88  ;;  %s4131_s28 = sshll.u32 (!%p4479_p6), %s592_s24, 4 }
  0xca   : > { %s593_s22 = scalar_lea.sflag (!%p4479_p6), [#allocation3], %s592_s24  ;;  %s596_s3 = scalar_lea.vmem (!%p4479_p6), [#allocation2], %s4131_s28 }
  0xd0   : > { %3743 = dma.done.wait (%p4080_p2), %s593_s22, 256  }
  0xd1   : > { %3745 = vsyncadd (%p4080_p2), %s593_s22, 4294967040  ;;  %p4480_p9 = scmp.eq.s32.totalorder %s3897_s0, 0 }
  0xd3   : > { %3747 = dma.done.wait (%p4480_p9), [#allocation5], 2048   ;;  %p4481_p5 = pmov %p4480_p9 }
  0xd5   : > { %3749 = vsyncadd (%p4481_p5), [#allocation5], 4294965248  ;;  %p4482_p3 = pmov %p4481_p5 }
  0xd7   : > { %3751 = dma.done.wait (%p4482_p3), [#allocation8], 3072   ;;  %p4483_p11 = pmov %p4482_p3 }
  0xd8   : > { %p4484_p12 = pmov %p4482_p3 }
  0xd9   : > { %3753 = vsyncadd (%p4483_p11), [#allocation8], 4294964224 }
  0xda   : > { %3755 = dma.done.wait (%p4484_p12), [#allocation11], 6144   ;;  %p4485_p13 = pmov %p4482_p3 }
  0xdb   : > { %p681_p2 = scmp.lt.s32.totalorder %s3897_s0, 1  ;;  %v3368_v0 = vld [vmem:[#allocation4] sm:$0xff]   ;;  %v3369_v1 = vld [vmem:[#allocation4 + $0x8] sm:$0xff]   ;;  %v3370_v2 = vld [vmem:[#allocation4 + $0x10] sm:$0xff]   ;;  %s4486_s12 = sld [smem:[#allocation17_spill]] }
  0xdc   : > { %3757 = vsyncadd (%p4485_p13), [#allocation11], 4294961152  ;;  %2921 = vmatprep.subr.bf16.mxu0 %v3368_v0  ;;  %v3371_v3 = vld [vmem:[#allocation4 + $0x18] sm:$0xff]   ;;  %v3372_v5 = vld [vmem:[#allocation4 + $0x20] sm:$0xff]   ;;  %s4487_s27 = sld [smem:[#allocation18_spill]]  ;;  %s4488_s24 = sld [smem:[#allocation23_spill]] }
  0xdd   : > { %s4501_s0 = smov (!%p681_p2, %s3897_s0), 1  ;;  %2922 = vmatpush3.bf16.msra.mxu0 %v3368_v0  ;;  %v3373_v6 = vld [vmem:[#allocation4 + $0x28] sm:$0xff]   ;;  %v3374_v7 = vld [vmem:[#allocation4 + $0x30] sm:$0xff]   ;;  %v3375_v8 = vld [vmem:[#allocation4 + $0x38] sm:$0xff]   ;;  %s4491_s23 = sld [smem:[#allocation22_spill]] }
  0xde   : > { %s2756_s30 = sshll.u32 %s4501_s0, 7  ;;  %2923 = vmatprep.subr.bf16.mxu0 %v3369_v1  ;;  %v3376_v25 = vld [vmem:[#allocation6] sm:$0xff]   ;;  %v3377_v26 = vld [vmem:[#allocation6 + $0x8] sm:$0xff]   ;;  %v3378_v27 = vld [vmem:[#allocation6 + $0x10] sm:$0xff]   ;;  %s4492_s20 = sld [smem:[#allocation24_spill]] }
  0xdf   : > { %v3379_v28 = vld [vmem:[#allocation6 + $0x18] sm:$0xff]   ;;  %v3380_v29 = vld [vmem:[#allocation6 + $0x20] sm:$0xff]   ;;  %v3381_v30 = vld [vmem:[#allocation6 + $0x28] sm:$0xff]   ;;  %s4495_s21 = sld [smem:[#allocation27_spill]] }
  0xe0   : > { %v3382_v31 = vld [vmem:[#allocation6 + $0x30] sm:$0xff]  }
  0xe1   : > { %s4160_s16 = scalar_lea.vmem %s4486_s12, %s2756_s30  ;;  %2924 = vmatpush3.bf16.msra.mxu0 %v3369_v1  ;;  %s4494_s12 = sld [smem:[#allocation26_spill]] }
  0xe2   : > { %2925 = vmatprep.subr.bf16.mxu0 %v3370_v2  ;;  %v697_v4 = vld [vmem:[%s4160_s16] sm:$0xff]  ;;  %v698_v9 = vld [vmem:[%s4160_s16 + $0x8] sm:$0xff]  ;;  %v699_v10 = vld [vmem:[%s4160_s16 + $0x10] sm:$0xff]  ;;  %s4183_s18 = scalar_lea.vmem %s4487_s27, %s2756_s30  ;;  %s4489_s28 = smov %s4488_s24 }
  0xe3   : > { %2937 = vmatprep.mubr.f32.mxu0 %v697_v4  ;;  %v700_v11 = vld [vmem:[%s4160_s16 + $0x18] sm:$0xff]  ;;  %v701_v12 = vld [vmem:[%s4160_s16 + $0x20] sm:$0xff]  ;;  %v702_v13 = vld [vmem:[%s4160_s16 + $0x28] sm:$0xff]  ;;  %s2758_s30 = sshll.u32 %s4501_s0, 4 }
  0xe4   : > { %v703_v14 = vld [vmem:[%s4160_s16 + $0x30] sm:$0xff]  ;;  %v704_v15 = vld [vmem:[%s4160_s16 + $0x38] sm:$0xff]  ;;  %v705_v16 = vld [vmem:[%s4160_s16 + $0x40] sm:$0xff] }
  0xe5   : > { %2926 = vmatpush3.bf16.msra.mxu0 %v3370_v2  ;;  %v706_v17 = vld [vmem:[%s4160_s16 + $0x48] sm:$0xff]  ;;  %v707_v18 = vld [vmem:[%s4160_s16 + $0x50] sm:$0xff]  ;;  %v708_v19 = vld [vmem:[%s4160_s16 + $0x58] sm:$0xff]  ;;  %s695_s27 = scalar_lea.vmem %s4495_s21, %s2758_s30 }
  0xe6   : > { %2927 = vmatprep.subr.bf16.mxu0 %v3371_v3  ;;  %v709_v20 = vld [vmem:[%s4160_s16 + $0x60] sm:$0xff]  ;;  %v710_v21 = vld [vmem:[%s4160_s16 + $0x68] sm:$0xff]  ;;  %v711_v22 = vld [vmem:[%s4160_s16 + $0x70] sm:$0xff] }
  0xe7   : > { %v712_v23 = vld [vmem:[%s4160_s16 + $0x78] sm:$0xff]  ;;  %v4186_v24 = vld [vmem:[%s4183_s18] sm:$0xff]  ;;  %v4190_v56 = vld [vmem:[%s4183_s18 + $0x8] sm:$0xff]  ;;  %s4490_s16 = sld [smem:[#allocation21_spill]] }
  0xe8   : > { %2993 = vmatprep.mubr.f32.mxu1 %v4186_v24  ;;  %v4193_v57 = vld [vmem:[%s4183_s18 + $0x10] sm:$0xff]  ;;  %v4198_v58 = vld [vmem:[%s4183_s18 + $0x18] sm:$0xff]  ;;  %v4201_v59 = vld [vmem:[%s4183_s18 + $0x20] sm:$0xff] }
  0xe9   : > { %2928 = vmatpush3.bf16.msra.mxu0 %v3371_v3  ;;  %v4206_v60 = vld [vmem:[%s4183_s18 + $0x28] sm:$0xff]  ;;  %v4209_v61 = vld [vmem:[%s4183_s18 + $0x30] sm:$0xff]  ;;  %v4214_v62 = vld [vmem:[%s4183_s18 + $0x38] sm:$0xff] }
  0xea   : > { %2929 = vmatprep.subr.bf16.mxu0 %v3372_v5  ;;  %v4217_v63 = vld [vmem:[%s4183_s18 + $0x40] sm:$0xff]  ;;  %v4222_v0 = vld [vmem:[%s4183_s18 + $0x48] sm:$0xff]  ;;  %v4225_v1 = vld [vmem:[%s4183_s18 + $0x50] sm:$0xff] }
  0xeb   : > { %v4230_v2 = vld [vmem:[%s4183_s18 + $0x58] sm:$0xff]  ;;  %v4233_v3 = vld [vmem:[%s4183_s18 + $0x60] sm:$0xff]  ;;  %v4238_v4 = vld [vmem:[%s4183_s18 + $0x68] sm:$0xff] }
  0xed   : > { %2930 = vmatpush3.bf16.msra.mxu0 %v3372_v5  ;;  %v4241_v5 = vld [vmem:[%s4183_s18 + $0x70] sm:$0xff] }
  0xee   : > { %2931 = vmatprep.subr.bf16.mxu0 %v3373_v6 }
  0xf1   : > { %2932 = vmatpush3.bf16.msra.mxu0 %v3373_v6  ;;  %v4246_v6 = vld [vmem:[%s4183_s18 + $0x78] sm:$0xff] }
  0xf2   : > { %2933 = vmatprep.subr.bf16.mxu0 %v3374_v7 }
  0xf5   : > { %2934 = vmatpush3.bf16.msra.mxu0 %v3374_v7  ;;  %v3383_v7 = vld [vmem:[#allocation6 + $0x38] sm:$0xff]  }
  0xf6   : > { %2935 = vmatprep.subr.bf16.mxu0 %v3375_v8 }
  0xf9   : > { %2936 = vmatpush3.bf16.msra.mxu0 %v3375_v8  ;;  %v2637_v8 = vld [vmem:[%s4437_s4] ss:$0 sm:$0xff] }
  0xfa   : > { %3017 = vmatprep.subr.bf16.mxu0 %v3376_v25 }
  0xfc   : > { %2938 = vmatmul.mubr.f32.vlgmr.msra.gmra.mrb[0].mxu0 %v698_v9 }
  0xfd   : > { %2940 = vmatprep.mubr.f32.mxu0 %v699_v10  ;;  %3018 = vmatpush3.bf16.msra.mxu0 %v3376_v25 }
  0xfe   : > { %3019 = vmatprep.subr.bf16.mxu0 %v3377_v26 }
 0x100   : > { %2941 = vmatmul.mubr.f32.gmra.mrb[2].mxu0 %v700_v11 }
 0x101   : > { %2943 = vmatprep.mubr.f32.mxu0 %v701_v12  ;;  %3020 = vmatpush3.bf16.msra.mxu0 %v3377_v26 }
 0x102   : > { %3021 = vmatprep.subr.bf16.mxu0 %v3378_v27 }
 0x104   : > { %2944 = vmatmul.mubr.f32.gmra.mrb[4].mxu0 %v702_v13 }
 0x105   : > { %2946 = vmatprep.mubr.f32.mxu0 %v703_v14  ;;  %3022 = vmatpush3.bf16.msra.mxu0 %v3378_v27 }
 0x106   : > { %3023 = vmatprep.subr.bf16.mxu0 %v3379_v28 }
 0x108   : > { %2947 = vmatmul.mubr.f32.gmra.mrb[6].mxu0 %v704_v15 }
 0x109   : > { %2949 = vmatprep.mubr.f32.mxu0 %v705_v16  ;;  %3024 = vmatpush3.bf16.msra.mxu0 %v3379_v28 }
 0x10a   : > { %3025 = vmatprep.subr.bf16.mxu0 %v3380_v29 }
 0x10c   : > { %2950 = vmatmul.mubr.f32.gmra.mrb[8].mxu0 %v706_v17 }
 0x10d   : > { %2952 = vmatprep.mubr.f32.mxu0 %v707_v18  ;;  %3026 = vmatpush3.bf16.msra.mxu0 %v3380_v29 }
 0x10e   : > { %3027 = vmatprep.subr.bf16.mxu0 %v3381_v30 }
 0x110   : > { %2953 = vmatmul.mubr.f32.gmra.mrb[10].mxu0 %v708_v19 }
 0x111   : > { %2955 = vmatprep.mubr.f32.mxu0 %v709_v20  ;;  %3028 = vmatpush3.bf16.msra.mxu0 %v3381_v30 }
 0x112   : > { %3029 = vmatprep.subr.bf16.mxu0 %v3382_v31 }
 0x114   : > { %2956 = vmatmul.mubr.f32.gmra.mrb[12].mxu0 %v710_v21 }
 0x115   : > { %2958 = vmatprep.mubr.f32.mxu0 %v711_v22  ;;  %3030 = vmatpush3.bf16.msra.mxu0 %v3382_v31 }
 0x116   : > { %3031 = vmatprep.subr.bf16.mxu0 %v3383_v7 }
 0x118   : > { %2959 = vmatmul.mubr.f32.gmra.mrb[14].mxu0 %v712_v23 }
 0x119   : > { %3032 = vmatpush3.bf16.msra.mxu0 %v3383_v7 }
 0x1cf   : > { %v2939_v32 = vpop.f32.mrb[0].mxu0 }
 0x1d0   : > { %v829_v33 = vpop.f32.mrb[1].mxu0 }
 0x1d1   : > { %v3167_v34 = vpack.c.bf16 %v2939_v32, %v829_v33 }
 0x1d3   : > { %v2942_v35 = vpop.f32.mrb[2].mxu0  ;;  %3168 = vmatprep.subr.bf16.mxu1 %v3167_v34 }
 0x1d4   : > { %v839_v36 = vpop.f32.mrb[3].mxu0  ;;  %3170 = vmatpush3.bf16.msra.mxu1 %v3167_v34 }
 0x1d5   : > { %v3171_v37 = vpack.c.bf16 %v2942_v35, %v839_v36 }
 0x1d7   : > { %v2945_v38 = vpop.f32.mrb[4].mxu0  ;;  %3172 = vmatprep.subr.bf16.mxu1 %v3171_v37 }
 0x1d8   : > { %v849_v39 = vpop.f32.mrb[5].mxu0  ;;  %3174 = vmatpush3.bf16.msra.mxu1 %v3171_v37 }
 0x1d9   : > { %v3175_v40 = vpack.c.bf16 %v2945_v38, %v849_v39 }
 0x1db   : > { %v2948_v41 = vpop.f32.mrb[6].mxu0  ;;  %3176 = vmatprep.subr.bf16.mxu1 %v3175_v40 }
 0x1dc   : > { %v859_v42 = vpop.f32.mrb[7].mxu0  ;;  %3178 = vmatpush3.bf16.msra.mxu1 %v3175_v40 }
 0x1dd   : > { %v3179_v43 = vpack.c.bf16 %v2948_v41, %v859_v42 }
 0x1df   : > { %v2951_v44 = vpop.f32.mrb[8].mxu0  ;;  %3180 = vmatprep.subr.bf16.mxu1 %v3179_v43 }
 0x1e0   : > { %v869_v45 = vpop.f32.mrb[9].mxu0  ;;  %3182 = vmatpush3.bf16.msra.mxu1 %v3179_v43 }
 0x1e1   : > { %v3183_v46 = vpack.c.bf16 %v2951_v44, %v869_v45 }
 0x1e3   : > { %v2954_v47 = vpop.f32.mrb[10].mxu0  ;;  %3184 = vmatprep.subr.bf16.mxu1 %v3183_v46 }
 0x1e4   : > { %v879_v48 = vpop.f32.mrb[11].mxu0  ;;  %3186 = vmatpush3.bf16.msra.mxu1 %v3183_v46 }
 0x1e5   : > { %v3187_v49 = vpack.c.bf16 %v2954_v47, %v879_v48 }
 0x1e7   : > { %v2957_v50 = vpop.f32.mrb[12].mxu0  ;;  %3188 = vmatprep.subr.bf16.mxu1 %v3187_v49 }
 0x1e8   : > { %v889_v51 = vpop.f32.mrb[13].mxu0  ;;  %3190 = vmatpush3.bf16.msra.mxu1 %v3187_v49 }
 0x1e9   : > { %v3191_v52 = vpack.c.bf16 %v2957_v50, %v889_v51 }
 0x1eb   : > { %v2960_v53 = vpop.f32.mrb[14].mxu0  ;;  %3192 = vmatprep.subr.bf16.mxu1 %v3191_v52 }
 0x1ec   : > { %v899_v54 = vpop.f32.mrb[15].mxu0  ;;  %3194 = vmatpush3.bf16.msra.mxu1 %v3191_v52 }
 0x1ed   : > { %v3195_v55 = vpack.c.bf16 %v2960_v53, %v899_v54 }
 0x1ef   : > { %3196 = vmatprep.subr.bf16.mxu1 %v3195_v55 }
 0x1f0   : > { %3198 = vmatpush3.bf16.msra.mxu1 %v3195_v55 }
 0x1f3   : > { %2994 = vmatmul.mubr.f32.vlgmr.msra.gmra.mrb[0].mxu1 %v4190_v56 }
 0x1f4   : > { %2996 = vmatprep.mubr.f32.mxu1 %v4193_v57 }
 0x1f7   : > { %2997 = vmatmul.mubr.f32.gmra.mrb[2].mxu1 %v4198_v58 }
 0x1f8   : > { %2999 = vmatprep.mubr.f32.mxu1 %v4201_v59 }
 0x1fb   : > { %3000 = vmatmul.mubr.f32.gmra.mrb[4].mxu1 %v4206_v60 }
 0x1fc   : > { %3002 = vmatprep.mubr.f32.mxu1 %v4209_v61 }
 0x1ff   : > { %3003 = vmatmul.mubr.f32.gmra.mrb[6].mxu1 %v4214_v62 }
 0x200   : > { %3005 = vmatprep.mubr.f32.mxu1 %v4217_v63 }
 0x203   : > { %3006 = vmatmul.mubr.f32.gmra.mrb[8].mxu1 %v4222_v0 }
 0x204   : > { %3008 = vmatprep.mubr.f32.mxu1 %v4225_v1 }
 0x207   : > { %3009 = vmatmul.mubr.f32.gmra.mrb[10].mxu1 %v4230_v2 }
 0x208   : > { %3011 = vmatprep.mubr.f32.mxu1 %v4233_v3 }
 0x20b   : > { %3012 = vmatmul.mubr.f32.gmra.mrb[12].mxu1 %v4238_v4 }
 0x20c   : > { %3014 = vmatprep.mubr.f32.mxu1 %v4241_v5 }
 0x20f   : > { %3015 = vmatmul.mubr.f32.gmra.mrb[14].mxu1 %v4246_v6 }
 0x210   : > { %3089 = vmatprep.mubr.f32.mxu1 %v4186_v24 }
 0x2c6   : > { %v2995_v9 = vpop.f32.mrb[0].mxu1 }
 0x2c7   : > { %v987_v10 = vadd.f32 %v2995_v9, %v2637_v8  ;;  %v981_v11 = vpop.f32.mrb[1].mxu1 }
 0x2c8   : > { %v982_v12 = vadd.f32 %v2637_v8, %v981_v11 }
 0x2c9   : > { %v1061_v15 = vmax.f32 %v987_v10, 0.0 }
 0x2ca   : > { %v1060_v13 = vmax.f32 %v982_v12, 0.0  ;;  %v2998_v14 = vpop.f32.mrb[2].mxu1 }
 0x2cb   : > { %v997_v16 = vadd.f32 %v2998_v14, %v2637_v8  ;;  %v991_v17 = vpop.f32.mrb[3].mxu1 }
 0x2cc   : > { %v992_v18 = vadd.f32 %v2637_v8, %v991_v17  ;;  %3033 = vmatprep.mubr.f32.mxu0 %v1060_v13 }
 0x2cd   : > { %3034 = vmatmul.mubr.f32.vlgmr.msra.gmra.mrb[16].mxu0 %v1061_v15  ;;  %v1063_v21 = vmax.f32 %v997_v16, 0.0 }
 0x2ce   : > { %v1062_v19 = vmax.f32 %v992_v18, 0.0  ;;  %v3001_v20 = vpop.f32.mrb[4].mxu1 }
 0x2cf   : > { %v1007_v22 = vadd.f32 %v3001_v20, %v2637_v8  ;;  %v1001_v23 = vpop.f32.mrb[5].mxu1 }
 0x2d0   : > { %v1002_v24 = vadd.f32 %v2637_v8, %v1001_v23  ;;  %3036 = vmatprep.mubr.f32.mxu0 %v1062_v19 }
 0x2d1   : > { %3037 = vmatmul.mubr.f32.gmra.mrb[18].mxu0 %v1063_v21  ;;  %v1065_v27 = vmax.f32 %v1007_v22, 0.0 }
 0x2d2   : > { %v1064_v25 = vmax.f32 %v1002_v24, 0.0  ;;  %v3004_v26 = vpop.f32.mrb[6].mxu1 }
 0x2d3   : > { %v1017_v28 = vadd.f32 %v3004_v26, %v2637_v8  ;;  %v1011_v29 = vpop.f32.mrb[7].mxu1 }
 0x2d4   : > { %v1012_v30 = vadd.f32 %v2637_v8, %v1011_v29  ;;  %3039 = vmatprep.mubr.f32.mxu0 %v1064_v25 }
 0x2d5   : > { %3040 = vmatmul.mubr.f32.gmra.mrb[20].mxu0 %v1065_v27  ;;  %v1067_v33 = vmax.f32 %v1017_v28, 0.0 }
 0x2d6   : > { %v1066_v31 = vmax.f32 %v1012_v30, 0.0  ;;  %v3007_v32 = vpop.f32.mrb[8].mxu1 }
 0x2d7   : > { %v1027_v34 = vadd.f32 %v3007_v32, %v2637_v8  ;;  %v1021_v35 = vpop.f32.mrb[9].mxu1 }
 0x2d8   : > { %v1022_v36 = vadd.f32 %v2637_v8, %v1021_v35  ;;  %3042 = vmatprep.mubr.f32.mxu0 %v1066_v31 }
 0x2d9   : > { %3043 = vmatmul.mubr.f32.gmra.mrb[22].mxu0 %v1067_v33  ;;  %v1069_v39 = vmax.f32 %v1027_v34, 0.0 }
 0x2da   : > { %v1068_v37 = vmax.f32 %v1022_v36, 0.0  ;;  %v3010_v38 = vpop.f32.mrb[10].mxu1 }
 0x2db   : > { %v1037_v40 = vadd.f32 %v3010_v38, %v2637_v8  ;;  %v1031_v41 = vpop.f32.mrb[11].mxu1 }
 0x2dc   : > { %v1032_v42 = vadd.f32 %v2637_v8, %v1031_v41  ;;  %3045 = vmatprep.mubr.f32.mxu0 %v1068_v37 }
 0x2dd   : > { %3046 = vmatmul.mubr.f32.gmra.mrb[24].mxu0 %v1069_v39  ;;  %v1071_v45 = vmax.f32 %v1037_v40, 0.0 }
 0x2de   : > { %v1070_v43 = vmax.f32 %v1032_v42, 0.0  ;;  %v3013_v44 = vpop.f32.mrb[12].mxu1 }
 0x2df   : > { %v1047_v46 = vadd.f32 %v3013_v44, %v2637_v8  ;;  %v1041_v47 = vpop.f32.mrb[13].mxu1 }
 0x2e0   : > { %v1042_v48 = vadd.f32 %v2637_v8, %v1041_v47  ;;  %3048 = vmatprep.mubr.f32.mxu0 %v1070_v43 }
 0x2e1   : > { %3049 = vmatmul.mubr.f32.gmra.mrb[26].mxu0 %v1071_v45  ;;  %v1073_v51 = vmax.f32 %v1047_v46, 0.0 }
 0x2e2   : > { %v1072_v49 = vmax.f32 %v1042_v48, 0.0  ;;  %v3016_v50 = vpop.f32.mrb[14].mxu1 }
 0x2e3   : > { %v1057_v52 = vadd.f32 %v3016_v50, %v2637_v8  ;;  %v1051_v53 = vpop.f32.mrb[15].mxu1 }
 0x2e4   : > { %v1052_v54 = vadd.f32 %v2637_v8, %v1051_v53  ;;  %3051 = vmatprep.mubr.f32.mxu0 %v1072_v49 }
 0x2e5   : > { %3052 = vmatmul.mubr.f32.gmra.mrb[28].mxu0 %v1073_v51  ;;  %v1075_v7 = vmax.f32 %v1057_v52, 0.0 }
 0x2e6   : > { %v1074_v55 = vmax.f32 %v1052_v54, 0.0 }
 0x2e8   : > { %3054 = vmatprep.mubr.f32.mxu0 %v1074_v55 }
 0x2e9   : > { %3055 = vmatmul.mubr.f32.gmra.mrb[30].mxu0 %v1075_v7 }
 0x3a0   : > { %v3035_v9 = vpop.f32.mrb[16].mxu0 }
 0x3a1   : > { %v1174_v10 = vpop.f32.mrb[17].mxu0 }
 0x3a2   : > { %v3199_v11 = vpack.c.bf16 %v3035_v9, %v1174_v10 }
 0x3a4   : > { %v3038_v12 = vpop.f32.mrb[18].mxu0  ;;  %3200 = vmatprep.subr.bf16.mxu1 %v3199_v11 }
 0x3a5   : > { %v1184_v13 = vpop.f32.mrb[19].mxu0  ;;  %3202 = vmatpush3.bf16.msra.mxu1 %v3199_v11 }
 0x3a6   : > { %v3203_v14 = vpack.c.bf16 %v3038_v12, %v1184_v13 }
 0x3a8   : > { %v3041_v15 = vpop.f32.mrb[20].mxu0  ;;  %3204 = vmatprep.subr.bf16.mxu1 %v3203_v14 }
 0x3a9   : > { %v1194_v16 = vpop.f32.mrb[21].mxu0  ;;  %3206 = vmatpush3.bf16.msra.mxu1 %v3203_v14 }
 0x3aa   : > { %v3207_v17 = vpack.c.bf16 %v3041_v15, %v1194_v16 }
 0x3ac   : > { %v3044_v8 = vpop.f32.mrb[22].mxu0  ;;  %3208 = vmatprep.subr.bf16.mxu1 %v3207_v17 }
 0x3ad   : > { %v1204_v18 = vpop.f32.mrb[23].mxu0  ;;  %3210 = vmatpush3.bf16.msra.mxu1 %v3207_v17 }
 0x3ae   : > { %v3211_v19 = vpack.c.bf16 %v3044_v8, %v1204_v18 }
 0x3b0   : > { %v3047_v20 = vpop.f32.mrb[24].mxu0  ;;  %3212 = vmatprep.subr.bf16.mxu1 %v3211_v19 }
 0x3b1   : > { %v1214_v21 = vpop.f32.mrb[25].mxu0  ;;  %3214 = vmatpush3.bf16.msra.mxu1 %v3211_v19 }
 0x3b2   : > { %v3215_v22 = vpack.c.bf16 %v3047_v20, %v1214_v21 }
 0x3b4   : > { %v3050_v23 = vpop.f32.mrb[26].mxu0  ;;  %3216 = vmatprep.subr.bf16.mxu1 %v3215_v22 }
 0x3b5   : > { %v1224_v24 = vpop.f32.mrb[27].mxu0  ;;  %3218 = vmatpush3.bf16.msra.mxu1 %v3215_v22 }
 0x3b6   : > { %v3219_v25 = vpack.c.bf16 %v3050_v23, %v1224_v24 }
 0x3b8   : > { %v3053_v26 = vpop.f32.mrb[28].mxu0  ;;  %3220 = vmatprep.subr.bf16.mxu1 %v3219_v25 }
 0x3b9   : > { %v1234_v27 = vpop.f32.mrb[29].mxu0  ;;  %3222 = vmatpush3.bf16.msra.mxu1 %v3219_v25 }
 0x3ba   : > { %v3223_v28 = vpack.c.bf16 %v3053_v26, %v1234_v27 }
 0x3bc   : > { %v3056_v29 = vpop.f32.mrb[30].mxu0  ;;  %3224 = vmatprep.subr.bf16.mxu1 %v3223_v28 }
 0x3bd   : > { %v1244_v30 = vpop.f32.mrb[31].mxu0  ;;  %3226 = vmatpush3.bf16.msra.mxu1 %v3223_v28 }
 0x3be   : > { %v3227_v31 = vpack.c.bf16 %v3056_v29, %v1244_v30 }
 0x3c0   : > { %3228 = vmatprep.subr.bf16.mxu1 %v3227_v31 }
 0x3c1   : > { %3230 = vmatpush3.bf16.msra.mxu1 %v3227_v31 }
 0x3c4   : > { %3090 = vmatmul.mubr.f32.vlgmr.msra.gmra.mrb[16].mxu1 %v4190_v56  ;;  %v729_v56 = vld [vmem:[%s596_s3] sm:$0xff] }
 0x3c5   : > { %3092 = vmatprep.mubr.f32.mxu1 %v4193_v57  ;;  %3145 = vmatprep.mubr.f32.mxu0 %v729_v56  ;;  %v3384_v57 = vld [vmem:[#allocation7] sm:$0xff]  }
 0x3c6   : > { %3148 = vmatprep.subr.bf16.mxu1 %v3384_v57 }
 0x3c7   : > { %3149 = vmatpush3.bf16.msra.mxu1 %v3384_v57 }
 0x3c8   : > { %3093 = vmatmul.mubr.f32.gmra.mrb[18].mxu1 %v4198_v58  ;;  %v3385_v58 = vld [vmem:[#allocation7 + $0x8] sm:$0xff]  }
 0x3c9   : > { %3095 = vmatprep.mubr.f32.mxu1 %v4201_v59  ;;  %3150 = vmatprep.subr.bf16.mxu1 %v3385_v58  ;;  %v3386_v59 = vld [vmem:[#allocation7 + $0x10] sm:$0xff]  }
 0x3cb   : > { %3151 = vmatpush3.bf16.msra.mxu1 %v3385_v58  ;;  %v730_v58 = vld [vmem:[%s596_s3 + $0x8] sm:$0xff]  ;;  %s4493_s3 = sld [smem:[#allocation25_spill]] }
 0x3cc   : > { %3096 = vmatmul.mubr.f32.gmra.mrb[20].mxu1 %v4206_v60  ;;  %3152 = vmatprep.subr.bf16.mxu1 %v3386_v59  ;;  %v3387_v60 = vld [vmem:[#allocation7 + $0x18] sm:$0xff]  }
 0x3cd   : > { %3098 = vmatprep.mubr.f32.mxu1 %v4209_v61  ;;  %v3388_v61 = vld [vmem:[#allocation7 + $0x20] sm:$0xff]  }
 0x3cf   : > { %3153 = vmatpush3.bf16.msra.mxu1 %v3386_v59  ;;  %v3392_v59 = vld [vmem:[#allocation9] ss:$8 sps:$4 sm:$0xff]  }
 0x3d0   : > { %3099 = vmatmul.mubr.f32.gmra.mrb[22].mxu1 %v4214_v62  ;;  %3154 = vmatprep.subr.bf16.mxu1 %v3387_v60  ;;  %v3389_v62 = vld [vmem:[#allocation7 + $0x28] sm:$0xff]  }
 0x3d1   : > { %3101 = vmatprep.mubr.f32.mxu1 %v4217_v63  ;;  %v3390_v63 = vld [vmem:[#allocation7 + $0x30] sm:$0xff]  }
 0x3d3   : > { %3155 = vmatpush3.bf16.msra.mxu1 %v3387_v60  ;;  %v3394_v60 = vld [vmem:[#allocation9 + $0x4] ss:$8 sps:$4 sm:$0xff]  }
 0x3d4   : > { %3102 = vmatmul.mubr.f32.gmra.mrb[24].mxu1 %v4222_v0  ;;  %3156 = vmatprep.subr.bf16.mxu1 %v3388_v61  ;;  %v3391_v0 = vld [vmem:[#allocation7 + $0x38] sm:$0xff]  }
 0x3d5   : > { %3104 = vmatprep.mubr.f32.mxu1 %v4225_v1  ;;  %v4273_v1 = vld [vmem:[%s4439_s6] ss:$0 sm:$0xff] }
 0x3d7   : > { %3157 = vmatpush3.bf16.msra.mxu1 %v3388_v61  ;;  %v3397_v61 = vld [vmem:[#allocation9 + $0x14] ss:$8 sps:$4 sm:$0xff]  }
 0x3d8   : > { %3105 = vmatmul.mubr.f32.gmra.mrb[26].mxu1 %v4230_v2  ;;  %3158 = vmatprep.subr.bf16.mxu1 %v3389_v62 }
 0x3d9   : > { %3107 = vmatprep.mubr.f32.mxu1 %v4233_v3 }
 0x3db   : > { %3159 = vmatpush3.bf16.msra.mxu1 %v3389_v62  ;;  %v3395_v62 = vld [vmem:[#allocation9 + $0x10] ss:$8 sps:$4 sm:$0xff]  }
 0x3dc   : > { %3108 = vmatmul.mubr.f32.gmra.mrb[28].mxu1 %v4238_v4  ;;  %3160 = vmatprep.subr.bf16.mxu1 %v3390_v63 }
 0x3dd   : > { %3110 = vmatprep.mubr.f32.mxu1 %v4241_v5 }
 0x3df   : > { %3161 = vmatpush3.bf16.msra.mxu1 %v3390_v63  ;;  %v3400_v63 = vld [vmem:[#allocation9 + $0x24] ss:$8 sps:$4 sm:$0xff]  }
 0x3e0   : > { %3111 = vmatmul.mubr.f32.gmra.mrb[30].mxu1 %v4246_v6  ;;  %3162 = vmatprep.subr.bf16.mxu1 %v3391_v0 }
 0x3e3   : > { %3163 = vmatpush3.bf16.msra.mxu1 %v3391_v0  ;;  %v3398_v0 = vld [vmem:[#allocation9 + $0x20] ss:$8 sps:$4 sm:$0xff]  }
 0x497   : > { %v3091_v2 = vpop.f32.mrb[16].mxu1 }
 0x498   : > { %v1332_v3 = vadd.f32 %v3091_v2, %v4273_v1  ;;  %v1326_v4 = vpop.f32.mrb[17].mxu1  ;;  %v3401_v2 = vld [vmem:[#allocation9 + $0x30] ss:$8 sps:$4 sm:$0xff]  }
 0x499   : > { %v1327_v5 = vadd.f32 %v4273_v1, %v1326_v4  ;;  %v3404_v4 = vld [vmem:[#allocation9 + $0x40] ss:$8 sps:$4 sm:$0xff]  }
 0x49a   : > { %v1406_v6 = vmax.f32 %v1332_v3, 0.0  ;;  %v3406_v3 = vld [vmem:[#allocation9 + $0x44] ss:$8 sps:$4 sm:$0xff]  }
 0x49b   : > { %v1405_v32 = vmax.f32 %v1327_v5, 0.0  ;;  %v3094_v33 = vpop.f32.mrb[18].mxu1  ;;  %v3409_v5 = vld [vmem:[#allocation9 + $0x54] ss:$8 sps:$4 sm:$0xff]  }
 0x49c   : > { %v1342_v34 = vadd.f32 %v3094_v33, %v4273_v1  ;;  %v1336_v35 = vpop.f32.mrb[19].mxu1  ;;  %v3410_v33 = vld [vmem:[#allocation9 + $0x60] ss:$8 sps:$4 sm:$0xff]  }
 0x49d   : > { %v3231_v36 = vpack.c.bf16 %v1406_v6, %v1405_v32  ;;  %v1337_v37 = vadd.f32 %v4273_v1, %v1336_v35  ;;  %v3407_v6 = vld [vmem:[#allocation9 + $0x50] ss:$8 sps:$4 sm:$0xff]   ;;  %v3412_v32 = vld [vmem:[#allocation9 + $0x64] ss:$8 sps:$4 sm:$0xff]  }
 0x49e   : > { %v1408_v38 = vmax.f32 %v1342_v34, 0.0 }
 0x49f   : > { %v1407_v39 = vmax.f32 %v1337_v37, 0.0  ;;  %v3097_v40 = vpop.f32.mrb[20].mxu1  ;;  %3232 = vmatprep.subr.bf16.mxu0 %v3231_v36  ;;  %v3413_v37 = vld [vmem:[#allocation9 + $0x70] ss:$8 sps:$4 sm:$0xff]  }
 0x4a0   : > { %v1352_v41 = vadd.f32 %v3097_v40, %v4273_v1  ;;  %v1346_v42 = vpop.f32.mrb[21].mxu1  ;;  %3234 = vmatpush3.bf16.msra.mxu0 %v3231_v36  ;;  %v3415_v36 = vld [vmem:[#allocation9 + $0x74] ss:$8 sps:$4 sm:$0xff]   ;;  %v3418_v40 = vld [vmem:[%s4489_s28 + $0x4] ss:$8 sps:$4 sm:$0xff]  }
 0x4a1   : > { %v3235_v43 = vpack.c.bf16 %v1408_v38, %v1407_v39  ;;  %v1347_v44 = vadd.f32 %v4273_v1, %v1346_v42  ;;  %v3785_v38 = vmov 0.0   ;;  %v3416_v39 = vld [vmem:[%s4488_s24] ss:$8 sps:$4 sm:$0xff]   ;;  %1973 = vmatprep.subr.bf16.mxu1 %v3418_v40  ;;  %v3419_v42 = vld [vmem:[%s4489_s28 + $0x10] ss:$8 sps:$4 sm:$0xff]  }
 0x4a2   : > { %v1410_v45 = vmax.f32 %v1352_v41, 0.0  ;;  %v3421_v41 = vld [vmem:[%s4489_s28 + $0x14] ss:$8 sps:$4 sm:$0xff]  }
 0x4a3   : > { %v1409_v46 = vmax.f32 %v1347_v44, 0.0  ;;  %v3100_v47 = vpop.f32.mrb[22].mxu1  ;;  %3236 = vmatprep.subr.bf16.mxu0 %v3235_v43  ;;  %v3422_v44 = vld [vmem:[%s4489_s28 + $0x20] ss:$8 sps:$4 sm:$0xff]   ;;  %v3505_v40 = vld [vmem:[#allocation10 + $0xd4] ss:$8 sps:$4 sm:$0xff]  }
 0x4a4   : > { %v1362_v48 = vadd.f32 %v3100_v47, %v4273_v1  ;;  %v1356_v49 = vpop.f32.mrb[23].mxu1  ;;  %3238 = vmatpush3.bf16.msra.mxu0 %v3235_v43  ;;  %v3424_v43 = vld [vmem:[%s4489_s28 + $0x24] ss:$8 sps:$4 sm:$0xff]  }
 0x4a5   : > { %v3239_v50 = vpack.c.bf16 %v1410_v45, %v1409_v46  ;;  %v1357_v51 = vadd.f32 %v4273_v1, %v1356_v49  ;;  %v3427_v45 = vld [vmem:[%s4489_s28 + $0x34] ss:$8 sps:$4 sm:$0xff]   ;;  %v3425_v46 = vld [vmem:[%s4489_s28 + $0x30] ss:$8 sps:$4 sm:$0xff]   ;;  %v3430_v47 = vld [vmem:[%s4489_s28 + $0x44] ss:$8 sps:$4 sm:$0xff]  }
 0x4a6   : > { %v1412_v52 = vmax.f32 %v1362_v48, 0.0  ;;  %v3428_v48 = vld [vmem:[%s4489_s28 + $0x40] ss:$8 sps:$4 sm:$0xff]   ;;  %v3433_v49 = vld [vmem:[%s4489_s28 + $0x54] ss:$8 sps:$4 sm:$0xff]  }
 0x4a7   : > { %v1411_v53 = vmax.f32 %v1357_v51, 0.0  ;;  %v3103_v54 = vpop.f32.mrb[24].mxu1  ;;  %3240 = vmatprep.subr.bf16.mxu0 %v3239_v50  ;;  %v3436_v51 = vld [vmem:[%s4489_s28 + $0x64] ss:$8 sps:$4 sm:$0xff]  }
 0x4a8   : > { %v1372_v55 = vadd.f32 %v3103_v54, %v4273_v1  ;;  %v1366_v7 = vpop.f32.mrb[25].mxu1  ;;  %3242 = vmatpush3.bf16.msra.mxu0 %v3239_v50  ;;  %v3431_v50 = vld [vmem:[%s4489_s28 + $0x50] ss:$8 sps:$4 sm:$0xff]  }
 0x4a9   : > { %v3243_v9 = vpack.c.bf16 %v1412_v52, %v1411_v53  ;;  %v1367_v10 = vadd.f32 %v4273_v1, %v1366_v7  ;;  %v3434_v52 = vld [vmem:[%s4489_s28 + $0x60] ss:$8 sps:$4 sm:$0xff]   ;;  %v3439_v53 = vld [vmem:[%s4489_s28 + $0x74] ss:$8 sps:$4 sm:$0xff]   ;;  %v3437_v54 = vld [vmem:[%s4489_s28 + $0x70] ss:$8 sps:$4 sm:$0xff]  }
 0x4aa   : > { %v1414_v11 = vmax.f32 %v1372_v55, 0.0  ;;  %v3442_v55 = vld [vmem:[%s4489_s28 + $0x84] ss:$8 sps:$4 sm:$0xff]   ;;  %v3440_v7 = vld [vmem:[%s4489_s28 + $0x80] ss:$8 sps:$4 sm:$0xff]  }
 0x4ab   : > { %v1413_v12 = vmax.f32 %v1367_v10, 0.0  ;;  %v3106_v13 = vpop.f32.mrb[26].mxu1  ;;  %3244 = vmatprep.subr.bf16.mxu0 %v3243_v9  ;;  %v3443_v10 = vld [vmem:[%s4489_s28 + $0x90] ss:$8 sps:$4 sm:$0xff]  }
 0x4ac   : > { %v1382_v14 = vadd.f32 %v3106_v13, %v4273_v1  ;;  %v1376_v15 = vpop.f32.mrb[27].mxu1  ;;  %3246 = vmatpush3.bf16.msra.mxu0 %v3243_v9  ;;  %v3445_v9 = vld [vmem:[%s4489_s28 + $0x94] ss:$8 sps:$4 sm:$0xff]  }
 0x4ad   : > { %v3247_v16 = vpack.c.bf16 %v1414_v11, %v1413_v12  ;;  %v1377_v17 = vadd.f32 %v4273_v1, %v1376_v15  ;;  %v3448_v11 = vld [vmem:[%s4489_s28 + $0xa4] ss:$8 sps:$4 sm:$0xff]   ;;  %v3446_v12 = vld [vmem:[%s4489_s28 + $0xa0] ss:$8 sps:$4 sm:$0xff]   ;;  %v3451_v13 = vld [vmem:[%s4489_s28 + $0xb4] ss:$8 sps:$4 sm:$0xff]  }
 0x4ae   : > { %v1416_v8 = vmax.f32 %v1382_v14, 0.0  ;;  %v3449_v14 = vld [vmem:[%s4489_s28 + $0xb0] ss:$8 sps:$4 sm:$0xff]   ;;  %v3454_v15 = vld [vmem:[%s4489_s28 + $0xc4] ss:$8 sps:$4 sm:$0xff]  }
 0x4af   : > { %v1415_v18 = vmax.f32 %v1377_v17, 0.0  ;;  %v3109_v19 = vpop.f32.mrb[28].mxu1  ;;  %3248 = vmatprep.subr.bf16.mxu0 %v3247_v16  ;;  %v3457_v17 = vld [vmem:[%s4489_s28 + $0xd4] ss:$8 sps:$4 sm:$0xff]  }
 0x4b0   : > { %v1392_v20 = vadd.f32 %v3109_v19, %v4273_v1  ;;  %v1386_v21 = vpop.f32.mrb[29].mxu1  ;;  %3250 = vmatpush3.bf16.msra.mxu0 %v3247_v16  ;;  %v3452_v16 = vld [vmem:[%s4489_s28 + $0xc0] ss:$8 sps:$4 sm:$0xff]  }
 0x4b1   : > { %v3251_v22 = vpack.c.bf16 %v1416_v8, %v1415_v18  ;;  %v1387_v23 = vadd.f32 %v4273_v1, %v1386_v21  ;;  %v3455_v8 = vld [vmem:[%s4489_s28 + $0xd0] ss:$8 sps:$4 sm:$0xff]   ;;  %v3460_v18 = vld [vmem:[%s4489_s28 + $0xe4] ss:$8 sps:$4 sm:$0xff]   ;;  %v3458_v19 = vld [vmem:[%s4489_s28 + $0xe0] ss:$8 sps:$4 sm:$0xff]  }
 0x4b2   : > { %v1418_v24 = vmax.f32 %v1392_v20, 0.0  ;;  %v2647_v20 = vld [vmem:[%s4490_s16] ss:$0 sm:$0xff] }
 0x4b3   : > { %v1417_v25 = vmax.f32 %v1387_v23, 0.0  ;;  %v3112_v26 = vpop.f32.mrb[30].mxu1  ;;  %3252 = vmatprep.subr.bf16.mxu0 %v3251_v22 }
 0x4b4   : > { %v1402_v27 = vadd.f32 %v3112_v26, %v4273_v1  ;;  %v1396_v28 = vpop.f32.mrb[31].mxu1  ;;  %3254 = vmatpush3.bf16.msra.mxu0 %v3251_v22 }
 0x4b5   : > { %v3255_v29 = vpack.c.bf16 %v1418_v24, %v1417_v25  ;;  %v1397_v30 = vadd.f32 %v4273_v1, %v1396_v28  ;;  %v3403_v1 = vld [vmem:[#allocation9 + $0x34] ss:$8 sps:$4 sm:$0xff]   ;;  %v3461_v28 = vld [vmem:[%s4489_s28 + $0xf0] ss:$8 sps:$4 sm:$0xff]  }
 0x4b6   : > { %v1420_v31 = vmax.f32 %v1402_v27, 0.0  ;;  %v3463_v27 = vld [vmem:[%s4489_s28 + $0xf4] ss:$8 sps:$4 sm:$0xff]  }
 0x4b7   : > { %v1419_v56 = vmax.f32 %v1397_v30, 0.0  ;;  %3256 = vmatprep.subr.bf16.mxu0 %v3255_v29  ;;  %v3466_v30 = vld [vmem:[#allocation10 + $0x4] ss:$8 sps:$4 sm:$0xff]  }
 0x4b8   : > { %3258 = vmatpush3.bf16.msra.mxu0 %v3255_v29  ;;  %v3464_v29 = vld [vmem:[#allocation10] ss:$8 sps:$4 sm:$0xff]  }
 0x4b9   : > { %v3259_v57 = vpack.c.bf16 %v1420_v31, %v1419_v56  ;;  %v3469_v31 = vld [vmem:[#allocation10 + $0x14] ss:$8 sps:$4 sm:$0xff]   ;;  %v3467_v56 = vld [vmem:[#allocation10 + $0x10] ss:$8 sps:$4 sm:$0xff]  }
 0x4bb   : > { %3260 = vmatprep.subr.bf16.mxu0 %v3259_v57 }
 0x4bc   : > { %3262 = vmatpush3.bf16.msra.mxu0 %v3259_v57  ;;  %v3472_v57 = vld [vmem:[#allocation10 + $0x24] ss:$8 sps:$4 sm:$0xff]  }
 0x4bd   : > { %1720 = vmatprep.subr.bf16.mxu0 %v3394_v60  ;;  %v3473_v60 = vld [vmem:[#allocation10 + $0x30] ss:$8 sps:$4 sm:$0xff]  }
 0x4bf   : > { %3146 = vmatmul.mubr.f32.vlgmr.msra.gmra.mrb[32].mxu0 %v730_v58  ;;  %v3470_v58 = vld [vmem:[#allocation10 + $0x20] ss:$8 sps:$4 sm:$0xff]  }
 0x4c0   : > { %1721 = vmatpush1.bf16.msra.mxu0 %v3392_v59  ;;  %1752 = vmatprep.mubr.f32.mxu0 %v3785_v38  ;;  %v3475_v59 = vld [vmem:[#allocation10 + $0x34] ss:$8 sps:$4 sm:$0xff]  }
 0x4c1   : > { %1722 = vmatprep.subr.bf16.mxu0 %v3397_v61  ;;  %v3478_v61 = vld [vmem:[#allocation10 + $0x44] ss:$8 sps:$4 sm:$0xff]  }
 0x4c4   : > { %1723 = vmatpush1.bf16.msra.mxu0 %v3395_v62  ;;  %v3476_v62 = vld [vmem:[#allocation10 + $0x40] ss:$8 sps:$4 sm:$0xff]  }
 0x4c5   : > { %1724 = vmatprep.subr.bf16.mxu0 %v3400_v63  ;;  %v3481_v63 = vld [vmem:[#allocation10 + $0x54] ss:$8 sps:$4 sm:$0xff]  }
 0x4c8   : > { %1725 = vmatpush1.bf16.msra.mxu0 %v3398_v0  ;;  %v3479_v0 = vld [vmem:[#allocation10 + $0x50] ss:$8 sps:$4 sm:$0xff]  }
 0x4c9   : > { %1726 = vmatprep.subr.bf16.mxu0 %v3403_v1  ;;  %v3484_v1 = vld [vmem:[#allocation10 + $0x64] ss:$8 sps:$4 sm:$0xff]  }
 0x4cc   : > { %1727 = vmatpush1.bf16.msra.mxu0 %v3401_v2  ;;  %v3482_v2 = vld [vmem:[#allocation10 + $0x60] ss:$8 sps:$4 sm:$0xff]  }
 0x4cd   : > { %1728 = vmatprep.subr.bf16.mxu0 %v3406_v3  ;;  %v3487_v3 = vld [vmem:[#allocation10 + $0x74] ss:$8 sps:$4 sm:$0xff]  }
 0x4d0   : > { %1729 = vmatpush1.bf16.msra.mxu0 %v3404_v4  ;;  %v3485_v4 = vld [vmem:[#allocation10 + $0x70] ss:$8 sps:$4 sm:$0xff]  }
 0x4d1   : > { %1730 = vmatprep.subr.bf16.mxu0 %v3409_v5  ;;  %v3490_v5 = vld [vmem:[#allocation10 + $0x84] ss:$8 sps:$4 sm:$0xff]  }
 0x4d4   : > { %1731 = vmatpush1.bf16.msra.mxu0 %v3407_v6  ;;  %v3488_v6 = vld [vmem:[#allocation10 + $0x80] ss:$8 sps:$4 sm:$0xff]  }
 0x4d5   : > { %1732 = vmatprep.subr.bf16.mxu0 %v3412_v32  ;;  %v3493_v32 = vld [vmem:[#allocation10 + $0x94] ss:$8 sps:$4 sm:$0xff]  }
 0x4d8   : > { %1733 = vmatpush1.bf16.msra.mxu0 %v3410_v33  ;;  %v3491_v33 = vld [vmem:[#allocation10 + $0x90] ss:$8 sps:$4 sm:$0xff]  }
 0x4d9   : > { %1734 = vmatprep.subr.bf16.mxu0 %v3415_v36  ;;  %v3499_v36 = vld [vmem:[#allocation10 + $0xb4] ss:$8 sps:$4 sm:$0xff]  }
 0x4dc   : > { %1735 = vmatpush1.bf16.msra.mxu0 %v3413_v37  ;;  %v3497_v37 = vld [vmem:[#allocation10 + $0xb0] ss:$8 sps:$4 sm:$0xff]  }
 0x4dd   : > { %2226 = vmatprep.subr.bf16.mxu0 %v3466_v30 }
 0x592   : > { %v3147_v34 = vpop.f32.mrb[32].mxu0 }
 0x593   : > { %v1487_v35 = vpop.f32.mrb[33].mxu0 }
 0x594   : > { %3164 = vmatprep.mubr.f32.mxu1 %v1487_v35  ;;  %v3494_v35 = vld [vmem:[#allocation10 + $0xa0] ss:$8 sps:$4 sm:$0xff]  }
 0x595   : > { %3165 = vmatmul.mubr.f32.vlgmr.msra.gmra.mrb[32].mxu1 %v3147_v34  ;;  %v3496_v34 = vld [vmem:[#allocation10 + $0xa4] ss:$8 sps:$4 sm:$0xff]  }
 0x596   : > { %1974 = vmatpush1.bf16.msra.mxu1 %v3416_v39  ;;  %v3500_v39 = vld [vmem:[#allocation10 + $0xc0] ss:$8 sps:$4 sm:$0xff]  }
 0x597   : > { %1975 = vmatprep.subr.bf16.mxu1 %v3421_v41  ;;  %v3503_v41 = vld [vmem:[#allocation10 + $0xd0] ss:$8 sps:$4 sm:$0xff]  }
 0x59a   : > { %1976 = vmatpush1.bf16.msra.mxu1 %v3419_v42  ;;  %v3508_v42 = vld [vmem:[#allocation10 + $0xe4] ss:$8 sps:$4 sm:$0xff]  }
 0x59b   : > { %1977 = vmatprep.subr.bf16.mxu1 %v3424_v43  ;;  %v3506_v43 = vld [vmem:[#allocation10 + $0xe0] ss:$8 sps:$4 sm:$0xff]  }
 0x59e   : > { %1978 = vmatpush1.bf16.msra.mxu1 %v3422_v44  ;;  %v1630_v44 = vlaneseq }
 0x59f   : > { %1979 = vmatprep.subr.bf16.mxu1 %v3427_v45 }
 0x5a0   : > { %v1631_v45 = vshrl.u32 %v1630_v44, 7 }
 0x5a2   : > { %1980 = vmatpush1.bf16.msra.mxu1 %v3425_v46  ;;  %v4394_v46 = vsub.s32 0, %v1631_v45 }
 0x5a3   : > { %1981 = vmatprep.subr.bf16.mxu1 %v3430_v47  ;;  %v1628_v47 = vld [vmem:[%s4491_s23] sm:$0x3] }
 0x5a6   : > { %1982 = vmatpush1.bf16.msra.mxu1 %v3428_v48  ;;  %v4399_v48 = vsub.s32 1, %v1631_v45 }
 0x5a7   : > { %1983 = vmatprep.subr.bf16.mxu1 %v3433_v49  ;;  %v1633_v49 = vrot.slane %v1628_v47, %v4394_v46 }
 0x5aa   : > { %1984 = vmatpush1.bf16.msra.mxu1 %v3431_v50  ;;  %v1637_v50 = vrot.slane %v1628_v47, %v4399_v48 }
 0x5ab   : > { %1985 = vmatprep.subr.bf16.mxu1 %v3436_v51 }
 0x5ae   : > { %1986 = vmatpush1.bf16.msra.mxu1 %v3434_v52 }
 0x5af   : > { %1987 = vmatprep.subr.bf16.mxu1 %v3439_v53 }
 0x5b2   : > { %1988 = vmatpush1.bf16.msra.mxu1 %v3437_v54 }
 0x5b3   : > { %1989 = vmatprep.subr.bf16.mxu1 %v3442_v55 }
 0x5b6   : > { %1990 = vmatpush1.bf16.msra.mxu1 %v3440_v7 }
 0x5b7   : > { %1991 = vmatprep.subr.bf16.mxu1 %v3445_v9 }
 0x5ba   : > { %1992 = vmatpush1.bf16.msra.mxu1 %v3443_v10 }
 0x5bb   : > { %1993 = vmatprep.subr.bf16.mxu1 %v3448_v11 }
 0x5be   : > { %1994 = vmatpush1.bf16.msra.mxu1 %v3446_v12 }
 0x5bf   : > { %1995 = vmatprep.subr.bf16.mxu1 %v3451_v13 }
 0x5c2   : > { %1996 = vmatpush1.bf16.msra.mxu1 %v3449_v14 }
 0x5c3   : > { %1997 = vmatprep.subr.bf16.mxu1 %v3454_v15  ;;  %v3511_v15 = vld [vmem:[#allocation10 + $0xf4] ss:$8 sps:$4 sm:$0xff]  }
 0x5c6   : > { %1998 = vmatpush1.bf16.msra.mxu1 %v3452_v16  ;;  %v3509_v16 = vld [vmem:[#allocation10 + $0xf0] ss:$8 sps:$4 sm:$0xff]  }
 0x5c7   : > { %1999 = vmatprep.subr.bf16.mxu1 %v3457_v17  ;;  %v3512_v17 = vld [vmem:[#allocation12 + $0x40] sm:$0xff]  }
 0x5ca   : > { %2000 = vmatpush1.bf16.msra.mxu1 %v3455_v8  ;;  %v3513_v8 = vld [vmem:[#allocation12] sm:$0xff]  }
 0x5cb   : > { %2001 = vmatprep.subr.bf16.mxu1 %v3460_v18  ;;  %v3514_v18 = vld [vmem:[#allocation12 + $0x48] sm:$0xff]  }
 0x5ce   : > { %2002 = vmatpush1.bf16.msra.mxu1 %v3458_v19  ;;  %v3515_v19 = vld [vmem:[#allocation12 + $0x8] sm:$0xff]  }
 0x5cf   : > { %2003 = vmatprep.subr.bf16.mxu1 %v3463_v27  ;;  %v3523_v27 = vld [vmem:[#allocation12 + $0x28] sm:$0xff]  }
 0x5d2   : > { %2004 = vmatpush1.bf16.msra.mxu1 %v3461_v28  ;;  %v3524_v28 = vld [vmem:[#allocation12 + $0x70] sm:$0xff]  }
 0x5d3   : > { %2899 = vmatprep.subr.bf16.mxu1 %v3512_v17 }
 0x668   : > { %v3166_v21 = vpop.f32.mrb[32].mxu1 }
 0x669   : > { %v1601_v22 = vpop.f32.mrb[33].mxu1  ;;  %v1607_v24 = vadd.f32 %v3166_v21, %v2647_v20  ;;  %v3517_v21 = vld [vmem:[#allocation12 + $0x10] sm:$0xff]  }
 0x66a   : > { %v1602_v23 = vadd.f32 %v2647_v20, %v1601_v22  ;;  %v3516_v20 = vld [vmem:[#allocation12 + $0x50] sm:$0xff]   ;;  %v3518_v22 = vld [vmem:[#allocation12 + $0x58] sm:$0xff]  }
 0x66b   : > { %v1611_v26 = vmax.f32 %v1607_v24, 0.0  ;;  %v3520_v24 = vld [vmem:[#allocation12 + $0x60] sm:$0xff]  }
 0x66c   : > { %v1610_v25 = vmax.f32 %v1602_v23, 0.0  ;;  %v3519_v23 = vld [vmem:[#allocation12 + $0x18] sm:$0xff]  }
 0x66e   : > { %1753 = vmatmul.mubr.f32.vlgmr.msra.gmra.mrb[34].mxu0 %v1610_v25  ;;  %v3521_v25 = vld [vmem:[#allocation12 + $0x20] sm:$0xff]  }
 0x66f   : > { %1758 = vmatprep.mubr.f32.mxu0 %v3785_v38  ;;  %2227 = vmatpush1.bf16.msra.mxu0 %v3464_v29  ;;  %v3502_v38 = vld [vmem:[#allocation10 + $0xc4] ss:$8 sps:$4 sm:$0xff]   ;;  %v1801_v29 = vld [vmem:[%s4492_s20] sm:$0x3] }
 0x670   : > { %2228 = vmatprep.subr.bf16.mxu0 %v3469_v31  ;;  %v1806_v30 = vrot.slane %v1801_v29, %v4394_v46  ;;  %v1810_v31 = vrot.slane %v1801_v29, %v4399_v48 }
 0x672   : > { %1759 = vmatmul.mubr.f32.gmra.mrb[36].mxu0 %v1611_v26  ;;  %v3522_v26 = vld [vmem:[#allocation12 + $0x68] sm:$0xff]  }
 0x673   : > { %2229 = vmatpush1.bf16.msra.mxu0 %v3467_v56 }
 0x674   : > { %2230 = vmatprep.subr.bf16.mxu0 %v3472_v57 }
 0x677   : > { %2231 = vmatpush1.bf16.msra.mxu0 %v3470_v58 }
 0x678   : > { %2232 = vmatprep.subr.bf16.mxu0 %v3475_v59 }
 0x67b   : > { %2233 = vmatpush1.bf16.msra.mxu0 %v3473_v60 }
 0x67c   : > { %2234 = vmatprep.subr.bf16.mxu0 %v3478_v61 }
 0x67f   : > { %2235 = vmatpush1.bf16.msra.mxu0 %v3476_v62 }
 0x680   : > { %2236 = vmatprep.subr.bf16.mxu0 %v3481_v63 }
 0x683   : > { %2237 = vmatpush1.bf16.msra.mxu0 %v3479_v0 }
 0x684   : > { %2238 = vmatprep.subr.bf16.mxu0 %v3484_v1 }
 0x687   : > { %2239 = vmatpush1.bf16.msra.mxu0 %v3482_v2 }
 0x688   : > { %2240 = vmatprep.subr.bf16.mxu0 %v3487_v3 }
 0x68b   : > { %2241 = vmatpush1.bf16.msra.mxu0 %v3485_v4  ;;  %v3525_v4 = vld [vmem:[#allocation12 + $0x30] sm:$0xff]  }
 0x68c   : > { %2242 = vmatprep.subr.bf16.mxu0 %v3490_v5  ;;  %v3526_v5 = vld [vmem:[#allocation12 + $0x78] sm:$0xff]  }
 0x68f   : > { %2243 = vmatpush1.bf16.msra.mxu0 %v3488_v6  ;;  %v3527_v6 = vld [vmem:[#allocation12 + $0x38] sm:$0xff]  }
 0x690   : > { %2244 = vmatprep.subr.bf16.mxu0 %v3493_v32  ;;  %v2054_v32 = vld [vmem:[%s4493_s3] sm:$0x3] }
 0x693   : > { %2245 = vmatpush1.bf16.msra.mxu0 %v3491_v33  ;;  %v2059_v33 = vrot.slane %v2054_v32, %v4394_v46 }
 0x694   : > { %2246 = vmatprep.subr.bf16.mxu0 %v3496_v34  ;;  %v2063_v34 = vrot.slane %v2054_v32, %v4399_v48  ;;  %v2736_v48 = vld [vmem:[%s4494_s12] ss:$0 sm:$0xff] }
 0x697   : > { %2247 = vmatpush1.bf16.msra.mxu0 %v3494_v35 }
 0x698   : > { %2248 = vmatprep.subr.bf16.mxu0 %v3499_v36 }
 0x69b   : > { %2249 = vmatpush1.bf16.msra.mxu0 %v3497_v37 }
 0x69c   : > { %2250 = vmatprep.subr.bf16.mxu0 %v3502_v38 }
 0x69f   : > { %2251 = vmatpush1.bf16.msra.mxu0 %v3500_v39 }
 0x6a0   : > { %2252 = vmatprep.subr.bf16.mxu0 %v3505_v40 }
 0x6a3   : > { %2253 = vmatpush1.bf16.msra.mxu0 %v3503_v41 }
 0x6a4   : > { %2254 = vmatprep.subr.bf16.mxu0 %v3508_v42 }
 0x6a7   : > { %2255 = vmatpush1.bf16.msra.mxu0 %v3506_v43 }
 0x6a8   : > { %2256 = vmatprep.subr.bf16.mxu0 %v3511_v15 }
 0x6ab   : > { %2257 = vmatpush1.bf16.msra.mxu0 %v3509_v16 }
 0x741   : > { %v1754_v51 = vpop.f32.mrb[34].mxu0 }
 0x742   : > { %v1755_v52 = vadd.f32 %v1754_v51, %v1633_v49  ;;  %v1756_v53 = vpop.f32.mrb[35].mxu0 }
 0x743   : > { %v1757_v54 = vadd.f32 %v1756_v53, %v1637_v50 }
 0x744   : > { %v1765_v9 = vmax.f32 %v1755_v52, 0.0 }
 0x745   : > { %v1766_v55 = vmax.f32 %v1757_v54, 0.0  ;;  %v1760_v7 = vpop.f32.mrb[36].mxu0 }
 0x746   : > { %v1761_v10 = vadd.f32 %v1760_v7, %v1633_v49  ;;  %v1762_v11 = vpop.f32.mrb[37].mxu0 }
 0x747   : > { %v1763_v12 = vadd.f32 %v1762_v11, %v1637_v50  ;;  %2005 = vmatprep.mubr.f32.mxu1 %v1766_v55 }
 0x748   : > { %2006 = vmatmul.mubr.f32.vlgmr.msra.gmra.mrb[34].mxu1 %v1765_v9  ;;  %v1767_v14 = vmax.f32 %v1761_v10, 0.0 }
 0x749   : > { %v1768_v13 = vmax.f32 %v1763_v12, 0.0  ;;  %2900 = vmatpush3.bf16.msra.mxu1 %v3513_v8 }
 0x74a   : > { %2901 = vmatprep.subr.bf16.mxu1 %v3514_v18 }
 0x74b   : > { %2011 = vmatprep.mubr.f32.mxu1 %v1768_v13 }
 0x74c   : > { %2012 = vmatmul.mubr.f32.gmra.mrb[36].mxu1 %v1767_v14 }
 0x74d   : > { %2902 = vmatpush3.bf16.msra.mxu1 %v3515_v19 }
 0x74e   : > { %2903 = vmatprep.subr.bf16.mxu1 %v3516_v20 }
 0x751   : > { %2904 = vmatpush3.bf16.msra.mxu1 %v3517_v21 }
 0x752   : > { %2905 = vmatprep.subr.bf16.mxu1 %v3518_v22 }
 0x755   : > { %2906 = vmatpush3.bf16.msra.mxu1 %v3519_v23 }
 0x756   : > { %2907 = vmatprep.subr.bf16.mxu1 %v3520_v24 }
 0x759   : > { %2908 = vmatpush3.bf16.msra.mxu1 %v3521_v25 }
 0x75a   : > { %2909 = vmatprep.subr.bf16.mxu1 %v3522_v26 }
 0x75d   : > { %2910 = vmatpush3.bf16.msra.mxu1 %v3523_v27 }
 0x75e   : > { %2911 = vmatprep.subr.bf16.mxu1 %v3524_v28 }
 0x761   : > { %2912 = vmatpush3.bf16.msra.mxu1 %v3525_v4 }
 0x762   : > { %2913 = vmatprep.subr.bf16.mxu1 %v3526_v5 }
 0x765   : > { %2914 = vmatpush3.bf16.msra.mxu1 %v3527_v6 }
 0x81b   : > { %v2007_v56 = vpop.f32.mrb[34].mxu1 }
 0x81c   : > { %v2008_v57 = vadd.f32 %v2007_v56, %v1806_v30  ;;  %v2009_v58 = vpop.f32.mrb[35].mxu1 }
 0x81d   : > { %v2010_v59 = vadd.f32 %v2009_v58, %v1810_v31 }
 0x81e   : > { %v2018_v62 = vmax.f32 %v2008_v57, 0.0 }
 0x81f   : > { %v2019_v60 = vmax.f32 %v2010_v59, 0.0  ;;  %v2013_v61 = vpop.f32.mrb[36].mxu1 }
 0x820   : > { %v2014_v63 = vadd.f32 %v2013_v61, %v1806_v30  ;;  %v2015_v0 = vpop.f32.mrb[37].mxu1 }
 0x821   : > { %v2016_v1 = vadd.f32 %v2015_v0, %v1810_v31  ;;  %2258 = vmatprep.mubr.f32.mxu0 %v2019_v60 }
 0x822   : > { %2259 = vmatmul.mubr.f32.vlgmr.msra.gmra.mrb[38].mxu0 %v2018_v62  ;;  %v2020_v3 = vmax.f32 %v2014_v63, 0.0 }
 0x823   : > { %v2021_v2 = vmax.f32 %v2016_v1, 0.0 }
 0x825   : > { %2264 = vmatprep.mubr.f32.mxu0 %v2021_v2 }
 0x826   : > { %2265 = vmatmul.mubr.f32.gmra.mrb[40].mxu0 %v2020_v3 }
 0x8f5   : > { %v2260_v35 = vpop.f32.mrb[38].mxu0 }
 0x8f6   : > { %v2261_v36 = vadd.f32 %v2260_v35, %v2059_v33  ;;  %v2262_v37 = vpop.f32.mrb[39].mxu0 }
 0x8f7   : > { %v2263_v38 = vadd.f32 %v2262_v37, %v2063_v34 }
 0x8f8   : > { %v2271_v41 = vmax.f32 %v2261_v36, 0.0 }
 0x8f9   : > { %v2272_v39 = vmax.f32 %v2263_v38, 0.0  ;;  %v2266_v40 = vpop.f32.mrb[40].mxu0 }
 0x8fa   : > { %v2267_v42 = vadd.f32 %v2266_v40, %v2059_v33  ;;  %v2268_v43 = vpop.f32.mrb[41].mxu0 }
 0x8fb   : > { %v2269_v44 = vadd.f32 %v2268_v43, %v2063_v34  ;;  %2442 = vmatprep.mubr.f32.mxu1 %v2272_v39 }
 0x8fc   : > { %2443 = vmatmul.mubr.f32.vlgmr.msra.gmra.mrb[38].mxu1 %v2271_v41  ;;  %v2273_v47 = vmax.f32 %v2267_v42, 0.0 }
 0x8fd   : > { %v2274_v45 = vmax.f32 %v2269_v44, 0.0 }
 0x8ff   : > { %2447 = vmatprep.mubr.f32.mxu1 %v2274_v45 }
 0x900   : > { %2448 = vmatmul.mubr.f32.gmra.mrb[40].mxu1 %v2273_v47 }
 0x9cf   : > { %v2915_v46 = vpop.f32.mrb[38].mxu1 }
 0x9d0   : > { %v2916_v49 = vpop.f32.mrb[39].mxu1 }
 0x9d1   : > { %v2917_v50 = vadd.f32 %v2916_v49, %v2915_v46 }
 0x9d3   : > { %v2445_v51 = vadd.f32 %v2917_v50, %v2736_v48  ;;  %v2918_v52 = vpop.f32.mrb[40].mxu1 }
 0x9d4   : > { %v2919_v53 = vpop.f32.mrb[41].mxu1 }
 0x9d5   : > { %2453 = vst [vmem:[%s695_s27] sm:$0xff] %v2445_v51  ;;  %v2920_v54 = vadd.f32 %v2919_v53, %v2918_v52 }
 0x9d7   : > { %v2450_v55 = vadd.f32 %v2920_v54, %v2736_v48 }
 0x9d9   : > { %2454 = vst [vmem:[%s695_s27 + $0x8] sm:$0xff] %v2450_v55 }
 0x9da PF: > { %p30_p0 = scmp.ge.s32.totalorder %s4064_s1, 4   ;;  %s4496_s24 = smov %s3764_s25 }
 0x9db   : > { %s4497_s25 = smov %s3768_s26  ;;  %s4498_s26 = smov %s4076_s11 }
 0x9dc   : > { %s4499_s27 = smov %s4064_s1  ;;  %32 = sbr.rel (!%p30_p0) target bundleno = 18 (0x12), region = 158 }
 0x9e3   :  { %2476 = vsyncpa [#allocation3], 1 }
 0x9e4   :  { %2478 = vsyncpa [#allocation3 + $0x1], 1 }
 0x9e5   :  { %2479 = vsyncpa [#allocation5], 1 }
 0x9e6   :  { %2480 = vsyncpa [#allocation8], 1 }
 0x9e7   :  { %2481 = vsyncpa [#allocation11], 1 }

</bundles_post_ra>
